<compile_context>
chip_gen: v7x
topology: tpu7x:2x2x1
jax: 0.10.0
libtpu: 0.0.40
codegen_flags: <defaults>
</compile_context>

<pallas_src>
import functools

import jax
import jax.numpy as jnp
from jax.experimental import pallas as pl
from jax.experimental.pallas import tpu as pltpu


def _fused_resblock_kernel(xt_ref, w1_ref, b1_ref, w2_ref, b2_ref, xres_ref,
                           o_ref, *, H, W, C, K, tile_rows):
    # xt_ref  : (1, tile_rows + 2*(K-1), W + 2*(K-1), C) bf16  padded input band
    # w*_ref  : (K*K*C, C) bf16 im2col-ordered weights
    # b*_ref  : (1, C) f32
    # xres_ref: (1, tile_rows, W, C) bf16   residual branch
    # o_ref   : (1, tile_rows, W, C) f32
    pad = K // 2
    TH = tile_rows + 2 * pad          # hidden rows incl. halo
    WH = W + 2 * pad                  # hidden cols incl. halo
    r0 = pl.program_id(1) * tile_rows  # first output row of this tile

    xp = xt_ref[0]                    # (TH + 2*pad, WH + 2*pad, C) bf16

    # ---- conv1 (+bias, ReLU): one matmul with contraction K*K*C (im2col) ----
    lhs1 = jnp.concatenate(
        [xp[ky:ky + TH, kx:kx + WH, :] for ky in range(K) for kx in range(K)],
        axis=-1).reshape(TH * WH, K * K * C)
    h = jnp.dot(lhs1, w1_ref[...], preferred_element_type=jnp.float32)
    h = jnp.maximum(h + b1_ref[...], 0.0).reshape(TH, WH, C)

    # Hidden halo positions outside the image must be the ZERO padding that
    # conv2 sees in the reference (not conv1 evaluated out of range) -> mask.
    gy = r0 - pad + jax.lax.broadcasted_iota(jnp.int32, (TH, WH, 1), 0)
    gx = -pad + jax.lax.broadcasted_iota(jnp.int32, (TH, WH, 1), 1)
    h = jnp.where((gy >= 0) & (gy < H) & (gx >= 0) & (gx < W), h, 0.0)
    h = h.astype(jnp.bfloat16)        # hidden stays bf16, VMEM-resident only

    # ---- conv2 (+res_scale-folded bias) + residual add ----
    lhs2 = jnp.concatenate(
        [h[ky:ky + tile_rows, kx:kx + W, :] for ky in range(K) for kx in range(K)],
        axis=-1).reshape(tile_rows * W, K * K * C)
    acc = jnp.dot(lhs2, w2_ref[...], preferred_element_type=jnp.float32)
    acc = acc + b2_ref[...]
    res = acc + xres_ref[0].reshape(tile_rows * W, C).astype(jnp.float32)
    o_ref[0] = res.reshape(tile_rows, W, C).astype(o_ref.dtype)


def _pick_tile_rows(H, max_rows):
    max_rows = max(1, min(H, int(max_rows)))
    for r in range(max_rows, 0, -1):
        if H % r == 0:
            return r
    return H


def res_block_forward(x_nchw, w1, b1, w2, b2, res_scale=1.0, tile_rows=None):
    """x_nchw: (N, C, H, W) f32.  w*: (K, K, C, C) HWIO.  b*: (C,) f32."""
    N, C, H, W = x_nchw.shape
    K = w1.shape[0]
    pad = K // 2

    if tile_rows is None:
        # ~2 MiB of bf16 input rows per block -> comfortable double-buffered
        # working set on v5e/v6e; halve this budget when targeting v7x (64 MiB).
        budget_rows = (2 * 1024 * 1024) // max(1, 2 * (W + 4 * pad) * C)
        tile_rows = _pick_tile_rows(H, budget_rows)
    else:
        tile_rows = _pick_tile_rows(H, tile_rows)
    num_tiles = H // tile_rows

    TI = tile_rows + 4 * pad          # input rows per block (halo of both convs)
    WI = W + 4 * pad

    # NHWC (channels on the lane axis), bf16 matmul operands.
    x = jnp.transpose(x_nchw, (0, 2, 3, 1)).astype(jnp.bfloat16)      # (N,H,W,C)
    xp = jnp.pad(x, ((0, 0), (2 * pad, 2 * pad), (2 * pad, 2 * pad), (0, 0)))
    # Stack the overlapping (tile + halo) row windows on their own axis so the
    # kernel can use plain non-overlapping BlockSpecs with auto-pipelining.
    xt = jnp.stack(
        [xp[:, t * tile_rows: t * tile_rows + TI] for t in range(num_tiles)],
        axis=1).reshape(N * num_tiles, TI, WI, C)
    x_res = x.reshape(N * num_tiles, tile_rows, W, C)

    w1r = w1.reshape(K * K * C, C).astype(jnp.bfloat16)
    w2r = (w2 * res_scale).reshape(K * K * C, C).astype(jnp.bfloat16)  # fold scale
    b1r = b1.reshape(1, C).astype(jnp.float32)
    b2r = (b2 * res_scale).reshape(1, C).astype(jnp.float32)

    kernel = functools.partial(_fused_resblock_kernel, H=H, W=W, C=C, K=K,
                               tile_rows=tile_rows)
    band = lambda n, t: (n * num_tiles + t, 0, 0, 0)

    out = pl.pallas_call(
        kernel,
        out_shape=jax.ShapeDtypeStruct((N * num_tiles, tile_rows, W, C),
                                       jnp.float32),
        grid=(N, num_tiles),
        in_specs=[
            pl.BlockSpec((1, TI, WI, C), band),
            pl.BlockSpec((K * K * C, C), lambda n, t: (0, 0)),
            pl.BlockSpec((1, C), lambda n, t: (0, 0)),
            pl.BlockSpec((K * K * C, C), lambda n, t: (0, 0)),
            pl.BlockSpec((1, C), lambda n, t: (0, 0)),
            pl.BlockSpec((1, tile_rows, W, C), band),
        ],
        out_specs=pl.BlockSpec((1, tile_rows, W, C), band),
        compiler_params=pltpu.CompilerParams(
            dimension_semantics=("parallel", "parallel"),
            vmem_limit_bytes=48 * 1024 * 1024),
    )(xt, w1r, b1r, w2r, b2r, x_res)

    out = out.reshape(N, H, W, C)
    return jnp.transpose(out, (0, 3, 1, 2))  # back to NCHW


def _reference(x_nchw, w1, b1, w2, b2, res_scale):
    # Pure-JAX reference that mirrors the kernel's numerics: bf16 operands,
    # f32 accumulation, bf16 hidden activation, res_scale folded into conv2.
    f32 = jnp.float32
    xb = x_nchw.astype(jnp.bfloat16).astype(f32)
    w1b = w1.astype(jnp.bfloat16).astype(f32)
    w2b = (w2 * res_scale).astype(jnp.bfloat16).astype(f32)
    dn = jax.lax.conv_dimension_numbers(x_nchw.shape, w1.shape,
                                        ("NCHW", "HWIO", "NCHW"))

    def conv(v, w):
        return jax.lax.conv_general_dilated(
            v, w, (1, 1), "SAME", dimension_numbers=dn,
            precision=jax.lax.Precision.HIGHEST)

    h = jnp.maximum(conv(xb, w1b) + b1[None, :, None, None], 0.0)
    hb = h.astype(jnp.bfloat16).astype(f32)
    return conv(hb, w2b) + (b2 * res_scale)[None, :, None, None] + xb


if __name__ == "__main__":
    key = jax.random.PRNGKey(0)
    N, C, H, W, K = 2, 4, 16, 16, 3
    res_scale = 1.0

    kx_, k1, k2, kb1, kb2 = jax.random.split(key, 5)
    x = jax.random.normal(kx_, (N, C, H, W), jnp.float32)
    # Conv2d(n_feats, n_feats, 3) synthetic parameters, HWIO layout.
    w1 = jax.random.normal(k1, (K, K, C, C), jnp.float32) * 0.1
    w2 = jax.random.normal(k2, (K, K, C, C), jnp.float32) * 0.1
    b1 = jax.random.normal(kb1, (C,), jnp.float32) * 0.1
    b2 = jax.random.normal(kb2, (C,), jnp.float32) * 0.1

    fwd = jax.jit(functools.partial(res_block_forward, res_scale=res_scale,
                                    tile_rows=8))  # 2 row-tiles -> halo path used
    out = jax.block_until_ready(fwd(x, w1, b1, w2, b2))

    ref = _reference(x, w1, b1, w2, b2, res_scale)
    assert out.shape == (N, C, H, W)
    # bf16 operands / f32 accumulation: loosened tolerance per review.
    assert jnp.allclose(out, ref, atol=1e-2, rtol=1e-2), (
        float(jnp.max(jnp.abs(out - ref))))

    print("KERNEL_OK")
</pallas_src>

<mosaic_0001>
module attributes {stable_mosaic.version = 11 : i64} {
  func.func @_fused_resblock_kernel(%arg0: i32, %arg1: i32, %arg2: memref<1x12x20x4xbf16, #tpu.memory_space<vmem>>, %arg3: memref<36x4xbf16, #tpu.memory_space<vmem>>, %arg4: memref<1x4xf32, #tpu.memory_space<vmem>>, %arg5: memref<36x4xbf16, #tpu.memory_space<vmem>>, %arg6: memref<1x4xf32, #tpu.memory_space<vmem>>, %arg7: memref<1x8x16x4xbf16, #tpu.memory_space<vmem>>, %arg8: memref<1x8x16x4xf32, #tpu.memory_space<vmem>>) attributes {dimension_semantics = [#tpu.dimension_semantics<parallel>, #tpu.dimension_semantics<parallel>], iteration_bounds = array<i64: 2, 2>, scalar_prefetch = 0 : i64, scratch_operands = 0 : i64, tpu.core_type = #tpu.core_type<tc>, window_params = [{transform_indices = @transform_0, window_bounds = array<i64: 1, 12, 20, 4>}, {pipeline_mode = #tpu.pipeline_mode<synchronous>, transform_indices = @transform_1, window_bounds = array<i64: 36, 4>}, {pipeline_mode = #tpu.pipeline_mode<synchronous>, transform_indices = @transform_2, window_bounds = array<i64: 1, 4>}, {pipeline_mode = #tpu.pipeline_mode<synchronous>, transform_indices = @transform_3, window_bounds = array<i64: 36, 4>}, {pipeline_mode = #tpu.pipeline_mode<synchronous>, transform_indices = @transform_4, window_bounds = array<i64: 1, 4>}, {transform_indices = @transform_5, window_bounds = array<i64: 1, 8, 16, 4>}, {transform_indices = @transform_6, window_bounds = array<i64: 1, 8, 16, 4>}]} {
    %c8_i32 = arith.constant 8 : i32
    %0 = arith.muli %arg1, %c8_i32 : i32
    %c0 = arith.constant 0 : index
    %c0_0 = arith.constant 0 : index
    %c0_1 = arith.constant 0 : index
    %c0_2 = arith.constant 0 : index
    %1 = vector.load %arg2[%c0, %c0_0, %c0_1, %c0_2] : memref<1x12x20x4xbf16, #tpu.memory_space<vmem>>, vector<1x12x20x4xbf16>
    %2 = vector.shape_cast %1 : vector<1x12x20x4xbf16> to vector<12x20x4xbf16>
    %3 = vector.extract_strided_slice %2 {offsets = [0, 0, 0], sizes = [10, 18, 4], strides = [1, 1, 1]} : vector<12x20x4xbf16> to vector<10x18x4xbf16>
    %4 = vector.extract_strided_slice %2 {offsets = [0, 1, 0], sizes = [10, 18, 4], strides = [1, 1, 1]} : vector<12x20x4xbf16> to vector<10x18x4xbf16>
    %5 = vector.extract_strided_slice %2 {offsets = [0, 2, 0], sizes = [10, 18, 4], strides = [1, 1, 1]} : vector<12x20x4xbf16> to vector<10x18x4xbf16>
    %6 = vector.extract_strided_slice %2 {offsets = [1, 0, 0], sizes = [10, 18, 4], strides = [1, 1, 1]} : vector<12x20x4xbf16> to vector<10x18x4xbf16>
    %7 = vector.extract_strided_slice %2 {offsets = [1, 1, 0], sizes = [10, 18, 4], strides = [1, 1, 1]} : vector<12x20x4xbf16> to vector<10x18x4xbf16>
    %8 = vector.extract_strided_slice %2 {offsets = [1, 2, 0], sizes = [10, 18, 4], strides = [1, 1, 1]} : vector<12x20x4xbf16> to vector<10x18x4xbf16>
    %9 = vector.extract_strided_slice %2 {offsets = [2, 0, 0], sizes = [10, 18, 4], strides = [1, 1, 1]} : vector<12x20x4xbf16> to vector<10x18x4xbf16>
    %10 = vector.extract_strided_slice %2 {offsets = [2, 1, 0], sizes = [10, 18, 4], strides = [1, 1, 1]} : vector<12x20x4xbf16> to vector<10x18x4xbf16>
    %11 = vector.extract_strided_slice %2 {offsets = [2, 2, 0], sizes = [10, 18, 4], strides = [1, 1, 1]} : vector<12x20x4xbf16> to vector<10x18x4xbf16>
    %12 = tpu.concatenate %3, %4, %5, %6, %7, %8, %9, %10, %11 in 2 : vector<10x18x4xbf16>, vector<10x18x4xbf16>, vector<10x18x4xbf16>, vector<10x18x4xbf16>, vector<10x18x4xbf16>, vector<10x18x4xbf16>, vector<10x18x4xbf16>, vector<10x18x4xbf16>, vector<10x18x4xbf16> -> vector<10x18x36xbf16>
    %13 = vector.shape_cast %12 : vector<10x18x36xbf16> to vector<180x36xbf16>
    %c0_3 = arith.constant 0 : index
    %c0_4 = arith.constant 0 : index
    %14 = vector.load %arg3[%c0_3, %c0_4] : memref<36x4xbf16, #tpu.memory_space<vmem>>, vector<36x4xbf16>
    %cst = arith.constant dense<0.000000e+00> : vector<180x4xf32>
    %15 = tpu.matmul %13, %14, %cst {dimension_numbers = #tpu.dot_dimension_numbers<[1], [0], [0], [1], [0, 0, 1, 1], [], []>} : vector<180x36xbf16>, vector<36x4xbf16>, vector<180x4xf32> -> vector<180x4xf32>
    %c0_5 = arith.constant 0 : index
    %c0_6 = arith.constant 0 : index
    %16 = vector.load %arg4[%c0_5, %c0_6] : memref<1x4xf32, #tpu.memory_space<vmem>>, vector<1x4xf32>
    %17 = vector.broadcast %16 : vector<1x4xf32> to vector<180x4xf32>
    %18 = arith.addf %15, %17 : vector<180x4xf32>
    %cst_7 = arith.constant 0.000000e+00 : f32
    %19 = vector.broadcast %cst_7 : f32 to vector<180x4xf32>
    %20 = arith.maximumf %18, %19 : vector<180x4xf32>
    %21 = vector.shape_cast %20 : vector<180x4xf32> to vector<10x18x4xf32>
    %c1_i32 = arith.constant 1 : i32
    %22 = arith.subi %0, %c1_i32 : i32
    %23 = tpu.iota {dimensions = array<i32: 0>} : vector<10x18x1xi32>
    %24 = vector.broadcast %22 : i32 to vector<10x18x1xi32>
    %25 = arith.addi %24, %23 : vector<10x18x1xi32>
    %26 = tpu.iota {dimensions = array<i32: 1>} : vector<10x18x1xi32>
    %c-1_i32 = arith.constant -1 : i32
    %27 = vector.broadcast %c-1_i32 : i32 to vector<10x18x1xi32>
    %28 = arith.addi %27, %26 : vector<10x18x1xi32>
    %c0_i32 = arith.constant 0 : i32
    %29 = vector.broadcast %c0_i32 : i32 to vector<10x18x1xi32>
    %30 = arith.cmpi sge, %25, %29 : vector<10x18x1xi32>
    %c16_i32 = arith.constant 16 : i32
    %31 = vector.broadcast %c16_i32 : i32 to vector<10x18x1xi32>
    %32 = arith.cmpi slt, %25, %31 : vector<10x18x1xi32>
    %33 = arith.andi %30, %32 : vector<10x18x1xi1>
    %c0_i32_8 = arith.constant 0 : i32
    %34 = vector.broadcast %c0_i32_8 : i32 to vector<10x18x1xi32>
    %35 = arith.cmpi sge, %28, %34 : vector<10x18x1xi32>
    %36 = arith.andi %33, %35 : vector<10x18x1xi1>
    %c16_i32_9 = arith.constant 16 : i32
    %37 = vector.broadcast %c16_i32_9 : i32 to vector<10x18x1xi32>
    %38 = arith.cmpi slt, %28, %37 : vector<10x18x1xi32>
    %39 = arith.andi %36, %38 : vector<10x18x1xi1>
    %cst_10 = arith.constant 0.000000e+00 : f32
    %40 = vector.shape_cast %39 : vector<10x18x1xi1> to vector<10x18x1xi1>
    %41 = vector.broadcast %40 : vector<10x18x1xi1> to vector<10x18x4xi1>
    %42 = vector.broadcast %cst_10 : f32 to vector<10x18x4xf32>
    %43 = arith.select %41, %21, %42 : vector<10x18x4xi1>, vector<10x18x4xf32>
    %44 = arith.truncf %43 : vector<10x18x4xf32> to vector<10x18x4xbf16>
    %45 = vector.extract_strided_slice %44 {offsets = [0, 0, 0], sizes = [8, 16, 4], strides = [1, 1, 1]} : vector<10x18x4xbf16> to vector<8x16x4xbf16>
    %46 = vector.extract_strided_slice %44 {offsets = [0, 1, 0], sizes = [8, 16, 4], strides = [1, 1, 1]} : vector<10x18x4xbf16> to vector<8x16x4xbf16>
    %47 = vector.extract_strided_slice %44 {offsets = [0, 2, 0], sizes = [8, 16, 4], strides = [1, 1, 1]} : vector<10x18x4xbf16> to vector<8x16x4xbf16>
    %48 = vector.extract_strided_slice %44 {offsets = [1, 0, 0], sizes = [8, 16, 4], strides = [1, 1, 1]} : vector<10x18x4xbf16> to vector<8x16x4xbf16>
    %49 = vector.extract_strided_slice %44 {offsets = [1, 1, 0], sizes = [8, 16, 4], strides = [1, 1, 1]} : vector<10x18x4xbf16> to vector<8x16x4xbf16>
    %50 = vector.extract_strided_slice %44 {offsets = [1, 2, 0], sizes = [8, 16, 4], strides = [1, 1, 1]} : vector<10x18x4xbf16> to vector<8x16x4xbf16>
    %51 = vector.extract_strided_slice %44 {offsets = [2, 0, 0], sizes = [8, 16, 4], strides = [1, 1, 1]} : vector<10x18x4xbf16> to vector<8x16x4xbf16>
    %52 = vector.extract_strided_slice %44 {offsets = [2, 1, 0], sizes = [8, 16, 4], strides = [1, 1, 1]} : vector<10x18x4xbf16> to vector<8x16x4xbf16>
    %53 = vector.extract_strided_slice %44 {offsets = [2, 2, 0], sizes = [8, 16, 4], strides = [1, 1, 1]} : vector<10x18x4xbf16> to vector<8x16x4xbf16>
    %54 = tpu.concatenate %45, %46, %47, %48, %49, %50, %51, %52, %53 in 2 : vector<8x16x4xbf16>, vector<8x16x4xbf16>, vector<8x16x4xbf16>, vector<8x16x4xbf16>, vector<8x16x4xbf16>, vector<8x16x4xbf16>, vector<8x16x4xbf16>, vector<8x16x4xbf16>, vector<8x16x4xbf16> -> vector<8x16x36xbf16>
    %55 = vector.shape_cast %54 : vector<8x16x36xbf16> to vector<128x36xbf16>
    %c0_11 = arith.constant 0 : index
    %c0_12 = arith.constant 0 : index
    %56 = vector.load %arg5[%c0_11, %c0_12] : memref<36x4xbf16, #tpu.memory_space<vmem>>, vector<36x4xbf16>
    %cst_13 = arith.constant dense<0.000000e+00> : vector<128x4xf32>
    %57 = tpu.matmul %55, %56, %cst_13 {dimension_numbers = #tpu.dot_dimension_numbers<[1], [0], [0], [1], [0, 0, 1, 1], [], []>} : vector<128x36xbf16>, vector<36x4xbf16>, vector<128x4xf32> -> vector<128x4xf32>
    %c0_14 = arith.constant 0 : index
    %c0_15 = arith.constant 0 : index
    %58 = vector.load %arg6[%c0_14, %c0_15] : memref<1x4xf32, #tpu.memory_space<vmem>>, vector<1x4xf32>
    %59 = vector.broadcast %58 : vector<1x4xf32> to vector<128x4xf32>
    %60 = arith.addf %57, %59 : vector<128x4xf32>
    %c0_16 = arith.constant 0 : index
    %c0_17 = arith.constant 0 : index
    %c0_18 = arith.constant 0 : index
    %c0_19 = arith.constant 0 : index
    %61 = vector.load %arg7[%c0_16, %c0_17, %c0_18, %c0_19] : memref<1x8x16x4xbf16, #tpu.memory_space<vmem>>, vector<1x8x16x4xbf16>
    %62 = vector.shape_cast %61 : vector<1x8x16x4xbf16> to vector<8x16x4xbf16>
    %63 = vector.shape_cast %62 : vector<8x16x4xbf16> to vector<128x4xbf16>
    %64 = arith.extf %63 : vector<128x4xbf16> to vector<128x4xf32>
    %65 = arith.addf %60, %64 : vector<128x4xf32>
    %66 = vector.shape_cast %65 : vector<128x4xf32> to vector<8x16x4xf32>
    %c0_20 = arith.constant 0 : index
    %c0_21 = arith.constant 0 : index
    %c0_22 = arith.constant 0 : index
    %c0_23 = arith.constant 0 : index
    %67 = vector.load %arg8[%c0_20, %c0_21, %c0_22, %c0_23] : memref<1x8x16x4xf32, #tpu.memory_space<vmem>>, vector<1x8x16x4xf32>
    %68 = vector.shape_cast %67 : vector<1x8x16x4xf32> to vector<8x16x4xf32>
    %69 = vector.shape_cast %66 : vector<8x16x4xf32> to vector<1x8x16x4xf32>
    tpu.vector_store %arg8[%c0_20, %c0_21, %c0_22, %c0_23], %69 {strides = array<i32>} : memref<1x8x16x4xf32, #tpu.memory_space<vmem>>, vector<1x8x16x4xf32>,
    return
  }
  func.func @transform_0(%arg0: i32, %arg1: i32) -> (i32, i32, i32, i32) {
    %c2_i32 = arith.constant 2 : i32
    %0 = arith.muli %arg0, %c2_i32 : i32
    %1 = arith.addi %0, %arg1 : i32
    %c0_i32 = arith.constant 0 : i32
    %c0_i32_0 = arith.constant 0 : i32
    %c0_i32_1 = arith.constant 0 : i32
    %c0_i32_2 = arith.constant 0 : i32
    return %1, %c0_i32, %c0_i32_0, %c0_i32_1 : i32, i32, i32, i32
  }
  func.func @transform_1(%arg0: i32, %arg1: i32) -> (i32, i32) {
    %c0_i32 = arith.constant 0 : i32
    %c0_i32_0 = arith.constant 0 : i32
    %c0_i32_1 = arith.constant 0 : i32
    return %c0_i32, %c0_i32_0 : i32, i32
  }
  func.func @transform_2(%arg0: i32, %arg1: i32) -> (i32, i32) {
    %c0_i32 = arith.constant 0 : i32
    %c0_i32_0 = arith.constant 0 : i32
    %c0_i32_1 = arith.constant 0 : i32
    return %c0_i32, %c0_i32_0 : i32, i32
  }
  func.func @transform_3(%arg0: i32, %arg1: i32) -> (i32, i32) {
    %c0_i32 = arith.constant 0 : i32
    %c0_i32_0 = arith.constant 0 : i32
    %c0_i32_1 = arith.constant 0 : i32
    return %c0_i32, %c0_i32_0 : i32, i32
  }
  func.func @transform_4(%arg0: i32, %arg1: i32) -> (i32, i32) {
    %c0_i32 = arith.constant 0 : i32
    %c0_i32_0 = arith.constant 0 : i32
    %c0_i32_1 = arith.constant 0 : i32
    return %c0_i32, %c0_i32_0 : i32, i32
  }
  func.func @transform_5(%arg0: i32, %arg1: i32) -> (i32, i32, i32, i32) {
    %c2_i32 = arith.constant 2 : i32
    %0 = arith.muli %arg0, %c2_i32 : i32
    %1 = arith.addi %0, %arg1 : i32
    %c0_i32 = arith.constant 0 : i32
    %c0_i32_0 = arith.constant 0 : i32
    %c0_i32_1 = arith.constant 0 : i32
    %c0_i32_2 = arith.constant 0 : i32
    return %1, %c0_i32, %c0_i32_0, %c0_i32_1 : i32, i32, i32, i32
  }
  func.func @transform_6(%arg0: i32, %arg1: i32) -> (i32, i32, i32, i32) {
    %c2_i32 = arith.constant 2 : i32
    %0 = arith.muli %arg0, %c2_i32 : i32
    %1 = arith.addi %0, %arg1 : i32
    %c0_i32 = arith.constant 0 : i32
    %c0_i32_0 = arith.constant 0 : i32
    %c0_i32_1 = arith.constant 0 : i32
    %c0_i32_2 = arith.constant 0 : i32
    return %1, %c0_i32, %c0_i32_0, %c0_i32_1 : i32, i32, i32, i32
  }
}

</mosaic_0001>

<bundles_post_ra>
// kernel: res_block_forward.1
= control target key start
LH: loop header
LB: loop body
LE: loop exit
PB: predicated region body
PF: predicated region fallthrough
CT: control target
= control target key end

     0   :  { %s4914_s21 = smov 0   ;;  %s4916_s22 = smov 0   ;;  %s6843_s0 = inlined_call_operand.vmem [shape: bf16[4,12,20,4], index: 0, kind: input, shape index: {}]   ;;  %s6844_s1 = inlined_call_operand.vmem [shape: bf16[36,4], index: 1, kind: input, shape index: {}]   ;;  %s6845_s2 = inlined_call_operand.vmem [shape: f32[1,4], index: 2, kind: input, shape index: {}]   ;;  %s6846_s3 = inlined_call_operand.vmem [shape: bf16[36,4], index: 3, kind: input, shape index: {}]   ;;  %s6847_s4 = inlined_call_operand.vmem [shape: f32[1,4], index: 4, kind: input, shape index: {}]   ;;  %s6848_s5 = inlined_call_operand.vmem [shape: bf16[4,8,16,4], index: 5, kind: input, shape index: {}]   ;;  %s6849_s6 = inlined_call_operand.vmem [shape: f32[4,8,16,4], index: 6, kind: output, shape index: {}]  }
   0x1   :  { %s4918_s23 = smov 0   ;;  %s4920_s24 = smov 0  }
   0x2   :  { %s4922_s25 = smov 0  }
   0x3 LB: > { %s25_s26 = sadd.s32 1, %s4859_s23  ;;  %s28_s27 = sadd.s32 1, %s4863_s24  ;;  %s4867_s25 = sphi %s4922_s25, %s16_s25   ;;  %s4863_s24 = sphi %s4920_s24, %s6926_s24   ;;  %s4859_s23 = sphi %s4918_s23, %s6925_s23   ;;  %s4855_s22 = sphi %s4916_s22, %s6924_s22   ;;  %s4851_s21 = sphi %s4914_s21, %s6923_s21  }
   0x4   : > { %p26_p0 = scmp.ge.s32.totalorder %s25_s26, 2  ;;  %p4542_p1 = scmp.ge.s32.totalorder %s4867_s25, 1 }
   0x5   : > { %p254_p2 = scmp.lt.s32.totalorder %s4867_s25, 5 }
   0x6   : > { %s6928_s26 = smov (%p26_p0, %s25_s26), 0  ;;  %s6930_s27 = smov (!%p26_p0, %s28_s27), %s4863_s24 }
   0x7   : > { %p255_p3 = pnand %p4542_p1, %p254_p2  ;;  %p30_p4 = scmp.ge.s32.totalorder %s6930_s27, 2 }
   0x8   : > { %s4543_s28 = sshll.u32 (!%p255_p3), %s4855_s22, 1  ;;  %vm631_vm0 = vcmask (!%p255_p3), 1046528   ;;  %vm440_vm1 = vsmask.f32 (!%p255_p3), 7424  ;;  %s4869_s10 = smov (!%p255_p3), 12   ;;  %v4805_v62 = vld [vmem:[%s6844_s1] sm:$0xff] (!%p255_p3)  }
   0x9   : > { %s6932_s27 = smov (%p30_p4, %s6930_s27), 0  ;;  %258 = sbr.rel (%p255_p3) target bundleno = 1051 (0x41b), region = 44 }
   0xa   : > { %s296_s29 = sadd.s32 (!%p255_p3), %s4851_s21, %s4543_s28  ;;  %s4870_s11 = smov (!%p255_p3), 20   ;;  %4684 = vmatprep.subr.bf16.mxu0 (!%p255_p3), %v4805_v62  ;;  %vm2590_vm2 = vcmask (!%p255_p3), 1041408   ;;  %vm994_vm3 = vcmask (!%p255_p3), 31744   ;;  %vm1035_vm4 = vcmask (!%p255_p3), 64512   ;;  %vm1076_vm5 = vcmask (!%p255_p3), 97280  }
   0xb   : > { %p297_p5 = scmp.lt.s32.totalorder (!%p255_p3), %s296_s29, 3  ;;  %s4871_s12 = smov (!%p255_p3), 8   ;;  %4685 = vmatpush3.bf16.msra.mxu0 (!%p255_p3), %v4805_v62  ;;  %vm1117_vm6 = vcmask (!%p255_p3), 130048   ;;  %vm6850_vm7 = vcmask (!%p255_p3), 162816   ;;  %vm1199_vm8 = vcmask (!%p255_p3), 195584   ;;  %vm6853_vm9 = vcmask (!%p255_p3), 228352  }
   0xc   : > { %s4872_s13 = smov (!%p255_p3), 4   ;;  %s4873_s14 = smov (!%p255_p3), 16   ;;  %vm6852_vm10 = vcmask (!%p255_p3), 261120   ;;  %vm6851_vm11 = vcmask (!%p255_p3), 293888  }
   0xd   : > { %s4874_s15 = smov (!%p255_p3), 24   ;;  %s4875_s16 = smov (!%p255_p3), 28  }
   0xe   : > { %s4876_s17 = smov (!%p255_p3), 32   ;;  %s4551_s18 = sshll.u32 (!%p255_p3), %s4851_s21, 3 }
   0xf   : > { %s4602_s19 = sadd.s32 (!%p255_p3), 4294967295, %s4551_s18 }
  0x10   : > { %s6934_s29 = smov (!%p297_p5, %s296_s29), 3 }
  0x11   : > { %s4738_s30 = smul.u32 144, %s6934_s29 }
  0x13   : > { %s4953_s9 = scalar_lea.vmem %s6843_s0, %s4738_s30 }
  0x14   : > { %v4956_v0 = vld [vmem:[%s4953_s9 + $0x18] sm:$0xff]   ;;  %v4959_v1 = vld [vmem:[%s4953_s9 + $0xc] sm:$0xff]   ;;  %v4964_v2 = vld [vmem:[%s4953_s9 + $0x14] ss:$0 sps:$4 sm:$0x33]  }
  0x15   : > { %714 = vrot.lane.b32.xlu1 %v4956_v0, %s4869_s10  ;;  %v4967_v3 = vld [vmem:[%s4953_s9] sm:$0xff]   ;;  %710 = vrot.lane.b32.xlu0 %v4959_v1, %s4869_s10  ;;  %v635_v4 = vrot.slane %v4959_v1, 1  ;;  %v457_v5 = vshrl.u32 %v4959_v1, 16  ;;  %v4974_v6 = vrot.slane %v4964_v2, 1  ;;  %v459_v11 = vshll.u32 %v4959_v1, 16  ;;  %v5049_v52 = vld [vmem:[%s4953_s9 + $0x30] sm:$0xff]  }
  0x16   : > { %v4977_v7 = vld [vmem:[%s4953_s9 + $0x8] ss:$0 sps:$4 sm:$0x33]   ;;  %v632_v8 = vrot.slane %v4967_v3, 1  ;;  %v442_v9 = vshrl.u32 %v4967_v3, 16  ;;  %v444_v10 = vshll.u32 %v4967_v3, 16 }
  0x17   : > { %v637_v12 = vsel %vm631_vm0, %v635_v4, %v4974_v6  ;;  %v633_v13 = vrot.slane %v4977_v7, 1  ;;  %v449_v14 = vshll.u32 %v4977_v7, 16  ;;  %v4988_v15 = vld [vmem:[%s4953_s9 + $0x20] ss:$0 sps:$4 sm:$0x33]   ;;  %v461_v17 = vrot.slane %v459_v11, 1 }
  0x18   : > { %v446_v16 = vrot.slane %v444_v10, 1  ;;  %v464_v18 = vshll.u32 %v4964_v2, 16  ;;  %v474_v21 = vshll.u32 %v4956_v0, 16  ;;  %v453_v23 = vshrl.u32 %v4977_v7, 16  ;;  %v5009_v36 = vld [vmem:[%s4953_s9 + $0x24] sm:$0xff]  }
  0x19   : > { %808 = vrot.lane.b32.xlu0 %v637_v12, %s4870_s11  ;;  %v634_v19 = vsel %vm631_vm0, %v632_v8, %v633_v13  ;;  %v451_v20 = vrot.slane %v449_v14, 1  ;;  %v462_v24 = vor.u32 %v461_v17, %v457_v5  ;;  %v472_v26 = vshrl.u32 %v4956_v0, 16  ;;  %v5014_v38 = vld [vmem:[%s4953_s9 + $0x2c] ss:$0 sps:$4 sm:$0x33]  }
  0x1a   : > { %662 = vrot.lane.b32.xlu1 %v634_v19, %s4871_s12  ;;  %v447_v22 = vor.u32 %v446_v16, %v442_v9  ;;  %v466_v25 = vrot.slane %v464_v18, 1  ;;  %v476_v27 = vrot.slane %v474_v21, 1  ;;  %v479_v28 = vshll.u32 %v4988_v15, 16  ;;  %v5055_v53 = vld [vmem:[%s4953_s9 + $0x38] ss:$0 sps:$4 sm:$0x33]  }
  0x1b   : > { %v455_v30 = vor.u32 %v453_v23, %v451_v20  ;;  %v638_v34 = vrot.slane %v4956_v0, 1  ;;  %v5006_v35 = vrot.slane %v4988_v15, 1  ;;  %v489_v40 = vshll.u32 %v5009_v36, 16  ;;  %v4806_v4 = vld [vmem:[%s6844_s1 + $0x8] sm:$0xff]  }
  0x1c   : > { %v452_v29 = vsel %vm440_vm1, %v447_v22, %v451_v20  ;;  %v467_v31 = vsel %vm440_vm1, %v462_v24, %v466_v25  ;;  %v477_v32 = vor.u32 %v476_v27, %v472_v26  ;;  %v481_v33 = vrot.slane %v479_v28, 1  ;;  %4686 = vmatprep.subr.bf16.mxu0 %v4806_v4  ;;  %v4807_v5 = vld [vmem:[%s6844_s1 + $0x10] ss:$0 sps:$4 sm:$0x33]  }
  0x1d   : > { %591 = vrot.lane.b32.xlu0 %v452_v29, %s4872_s13  ;;  %v640_v39 = vsel %vm631_vm0, %v638_v34, %v5006_v35  ;;  %v487_v41 = vshrl.u32 %v5009_v36, 16  ;;  %v491_v42 = vrot.slane %v489_v40, 1  ;;  %v494_v43 = vshll.u32 %v5014_v38, 16  ;;  %4687 = vmatpush3.bf16.msra.mxu0 %v4806_v4  ;;  %v5159_v34 = vld [vmem:[%s4953_s9 + $0x50] ss:$0 sps:$4 sm:$0x33]  }
  0x1e   : > { %666 = vrot.lane.b32.xlu1 %v637_v12, %s4871_s12  ;;  %v482_v37 = vsel %vm440_vm1, %v477_v32, %v481_v33  ;;  %v468_v47 = vshrl.u32 %v4964_v2, 16  ;;  %v641_v49 = vrot.slane %v5009_v36, 1  ;;  %v5040_v50 = vrot.slane %v5014_v38, 1  ;;  %4736 = vmatprep.subr.msk.bf16.mxu0 %vm2590_vm2, %v4807_v5  ;;  %v5097_v12 = vld [vmem:[%s4953_s9 + $0x3c] sm:$0xff]  }
  0x1f   : > { %v492_v44 = vor.u32 %v491_v42, %v487_v41  ;;  %v5028_v45 = vrot.slane %v494_v43, 1  ;;  %v504_v54 = vshll.u32 %v5049_v52, 16  ;;  %v483_v55 = vshrl.u32 %v4988_v15, 16 }
  0x20   : > { %v470_v48 = vor.u32 %v468_v47, %v466_v25  ;;  %v643_v51 = vsel %vm631_vm0, %v641_v49, %v5040_v50  ;;  %v502_v56 = vshrl.u32 %v5049_v52, 16  ;;  %v509_v58 = vshll.u32 %v5055_v53, 16 }
  0x21   : > { %595 = vrot.lane.b32.xlu0 %v467_v31, %s4872_s13  ;;  %v497_v46 = vsel %vm440_vm1, %v492_v44, %v5028_v45  ;;  %v506_v57 = vrot.slane %v504_v54, 1  ;;  %v485_v59 = vor.u32 %v483_v55, %v481_v33  ;;  %v2592_v8 = vsel %vm2590_vm2, %v4807_v5, 0 }
  0x22   : > { %593 = vrot.lane.b32.xlu1 %v455_v30, %s4872_s13  ;;  %v511_v61 = vrot.slane %v509_v58, 1  ;;  %v644_v9 = vrot.slane %v5049_v52, 1  ;;  %v5089_v10 = vrot.slane %v5055_v53, 1  ;;  %4689 = vmatpush3.bf16.msra.mxu0 %v2592_v8  ;;  %v519_v14 = vshll.u32 %v5097_v12, 16 }
  0x23   : > { %v507_v60 = vor.u32 %v506_v57, %v502_v56  ;;  %v498_v20 = vshrl.u32 %v5014_v38, 16  ;;  %v647_v23 = vrot.slane %v5097_v12, 1  ;;  %v513_v26 = vshrl.u32 %v5055_v53, 16 }
  0x24   : > { %v646_v11 = vsel %vm631_vm0, %v644_v9, %v5089_v10  ;;  %v521_v16 = vrot.slane %v519_v14, 1  ;;  %v539_v41 = vshll.u32 %v5159_v34, 16  ;;  %v1346_v55 = vlaneseq }
  0x25   : > { %765 = vrot.lane.b32.xlu0 %v467_v31, %s4873_s14  ;;  %v512_v63 = vsel %vm440_vm1, %v507_v60, %v511_v61  ;;  %v500_v22 = vor.u32 %v498_v20, %v5028_v45  ;;  %v515_v27 = vor.u32 %v513_v26, %v511_v61  ;;  %v4801_v31 = vld [vmem:[%s4953_s9 + $0x48] sm:$0xff]  }
  0x26   : > { %769 = vrot.lane.b32.xlu1 %v482_v37, %s4873_s14  ;;  %v5170_v45 = vrot.slane %v539_v41, 1  ;;  %v650_v58 = vrot.slane %v4801_v31, 1  ;;  %v5201_v61 = vshrl.u32 %v1346_v55, 7 }
  0x29   : > { %812 = vrot.lane.b32.xlu0 %v640_v39, %s4870_s11 }
  0x2a   : > { %856 = vrot.lane.b32.xlu1 %v4956_v0, %s4874_s15 }
  0x2d   : > { %664 = vrot.lane.b32.xlu0 %v633_v13, %s4871_s12  ;;  %v5103_v13 = vld [vmem:[%s4953_s9 + $0x44] ss:$0 sps:$4 sm:$0x33]  }
  0x2e   : > { %860 = vrot.lane.b32.xlu1 %v5009_v36, %s4874_s15  ;;  %v524_v17 = vshll.u32 %v5103_v13, 16  ;;  %v5128_v24 = vrot.slane %v5103_v13, 1  ;;  %v528_v62 = vshrl.u32 %v5103_v13, 16 }
  0x30   : > { %v5115_v19 = vrot.slane %v524_v17, 1  ;;  %v649_v25 = vsel %vm631_vm0, %v647_v23, %v5128_v24  ;;  %v5233_v23 = vld [vmem:[%s4953_s9 + $0x5c] ss:$0 sps:$4 sm:$0x33]  }
  0x31   : > { %911 = vrot.lane.b32.xlu0 %v482_v37, %s4875_s16 }
  0x32   : > { %712 = vrot.lane.b32.xlu1 %v4964_v2, %s4869_s10 }
  0x35   : > { %915 = vrot.lane.b32.xlu0 %v497_v46, %s4875_s16 }
  0x36   : > { %954 = vrot.lane.b32.xlu1 %v640_v39, %s4876_s17 }
  0x39   : > { %599 = vrot.lane.b32.xlu0 %v482_v37, %s4872_s13 }
  0x3a   : > { %767 = vrot.lane.b32.xlu1 %v470_v48, %s4873_s14 }
  0x3d   : > { %958 = vrot.lane.b32.xlu0 %v643_v51, %s4876_s17 }
  0x3e   : > { %603 = vrot.lane.b32.xlu1 %v497_v46, %s4872_s13 }
  0x41   : > { %670 = vrot.lane.b32.xlu0 %v640_v39, %s4871_s12  ;;  %v532_v39 = vshrl.u32 %v4801_v31, 16 }
  0x42   : > { %810 = vrot.lane.b32.xlu1 %v4974_v6, %s4870_s11 }
  0x45   : > { %674 = vrot.lane.b32.xlu0 %v643_v51, %s4871_s12 }
  0x46   : > { %718 = vrot.lane.b32.xlu1 %v5009_v36, %s4869_s10 }
  0x49   : > { %858 = vrot.lane.b32.xlu0 %v4988_v15, %s4874_s15 }
  0x4a   : > { %722 = vrot.lane.b32.xlu1 %v5049_v52, %s4869_s10 }
  0x4d   : > { %773 = vrot.lane.b32.xlu0 %v497_v46, %s4873_s14 }
  0x4e   : > { %913 = vrot.lane.b32.xlu1 %v485_v59, %s4875_s16 }
  0x51   : > { %597 = vrot.lane.b32.xlu0 %v470_v48, %s4872_s13 }
  0x52   : > { %777 = vrot.lane.b32.xlu1 %v512_v63, %s4873_s14 }
  0x55   : > { %816 = vrot.lane.b32.xlu0 %v643_v51, %s4870_s11  ;;  %v4877_v51 = vmov 1966171168  }
  0x56   : > { %956 = vrot.lane.b32.xlu1 %v5006_v35, %s4876_s17  ;;  %v1344_v54 = vunpack.c.l.s4 %v4877_v51 }
  0x58   : > { %v1345_v60 = vunpack.c.0.s8 %v1344_v54 }
  0x59   : > { %601 = vrot.lane.b32.xlu0 %v485_v59, %s4872_s13 }
  0x5a   : > { %668 = vrot.lane.b32.xlu1 %v4974_v6, %s4871_s12  ;;  %v517_v6 = vshrl.u32 %v5097_v12, 16  ;;  %v5218_v14 = vsub.s32 %v1345_v60, %v5201_v61 }
  0x5c   : > { %v522_v18 = vor.u32 %v521_v16, %v517_v6  ;;  %v5221_v6 = vor.u32 %v528_v62, %v5115_v19 }
  0x5d   : > { %820 = vrot.lane.b32.xlu0 %v646_v11, %s4870_s11 }
  0x5e   : > { %864 = vrot.lane.b32.xlu1 %v5049_v52, %s4874_s15  ;;  %v527_v21 = vsel %vm440_vm1, %v522_v18, %v5115_v19  ;;  %v5225_v18 = vld [vmem:[%s4953_s9 + $0x54] sm:$0xff]  }
  0x5f   : > { %v549_v19 = vshll.u32 %v5225_v18, 16 }
  0x61   : > { %672 = vrot.lane.b32.xlu0 %v5006_v35, %s4871_s12 }
  0x62   : > { %716 = vrot.lane.b32.xlu1 %v4988_v15, %s4869_s10 }
  0x65   : > { %868 = vrot.lane.b32.xlu0 %v5097_v12, %s4874_s15 }
  0x66   : > { %919 = vrot.lane.b32.xlu1 %v512_v63, %s4875_s16 }
  0x69   : > { %720 = vrot.lane.b32.xlu0 %v5014_v38, %s4869_s10 }
  0x6a   : > { %771 = vrot.lane.b32.xlu1 %v485_v59, %s4873_s14  ;;  %v5193_v59 = vrot.slane %v5159_v34, 1 }
  0x6c   : > { %v5207_v5 = vsel %vm631_vm0, %v650_v58, %v5193_v59 }
  0x6d   : > { %923 = vrot.lane.b32.xlu0 %v527_v21, %s4875_s16 }
  0x6e   : > { %962 = vrot.lane.b32.xlu1 %v646_v11, %s4876_s17 }
  0x71   : > { %775 = vrot.lane.b32.xlu0 %v500_v22, %s4873_s14 }
  0x72   : > { %814 = vrot.lane.b32.xlu1 %v5006_v35, %s4870_s11  ;;  %v534_v35 = vshll.u32 %v4801_v31, 16 }
  0x74   : > { %v536_v40 = vrot.slane %v534_v35, 1  ;;  %v551_v35 = vrot.slane %v549_v19, 1 }
  0x75   : > { %966 = vrot.lane.b32.xlu0 %v649_v25, %s4876_s17 }
  0x76   : > { %607 = vrot.lane.b32.xlu1 %v512_v63, %s4872_s13  ;;  %v537_v44 = vor.u32 %v536_v40, %v532_v39 }
  0x78   : > { %v5181_v48 = vsel %vm440_vm1, %v537_v44, %v5170_v45 }
  0x79   : > { %818 = vrot.lane.b32.xlu0 %v5040_v50, %s4870_s11 }
  0x7a   : > { %862 = vrot.lane.b32.xlu1 %v5014_v38, %s4874_s15 }
  0x7d   : > { %678 = vrot.lane.b32.xlu0 %v646_v11, %s4871_s12 }
  0x7e   : > { %866 = vrot.lane.b32.xlu1 %v5055_v53, %s4874_s15 }
  0x81   : > { %917 = vrot.lane.b32.xlu0 %v500_v22, %s4875_s16 }
  0x82   : > { %611 = vrot.lane.b32.xlu1 %v527_v21, %s4872_s13 }
  0x85   : > { %726 = vrot.lane.b32.xlu0 %v5097_v12, %s4869_s10 }
  0x86   : > { %921 = vrot.lane.b32.xlu1 %v515_v27, %s4875_s16 }
  0x87   : > { %v5150_v28 = vpop.permute.xlu1 %714  ;;  %v711_v29 = vpop.permute.xlu0 %710 }
  0x89   : > { %960 = vrot.lane.b32.xlu0 %v5040_v50, %s4876_s17 }
  0x8a   : > { %605 = vrot.lane.b32.xlu1 %v500_v22, %s4872_s13 }
  0x8b   : > { %v809_v30 = vpop.permute.xlu0 %808 }
  0x8c   : > { %v663_v32 = vpop.permute.xlu1 %662 }
  0x8d   : > { %682 = vrot.lane.b32.xlu0 %v649_v25, %s4871_s12 }
  0x8e   : > { %781 = vrot.lane.b32.xlu1 %v527_v21, %s4873_s14 }
  0x8f   : > { %v592_v33 = vpop.permute.xlu0 %591 }
  0x90   : > { %v667_v37 = vpop.permute.xlu1 %666  ;;  %v996_v49 = vsel %vm994_vm3, %v4967_v3, %v592_v33  ;;  %v547_v33 = vshrl.u32 %v5225_v18, 16 }
  0x91   : > { %964 = vrot.lane.b32.xlu0 %v5089_v10, %s4876_s17  ;;  %v1037_v56 = vsel %vm1035_vm4, %v996_v49, %v663_v32 }
  0x92   : > { %609 = vrot.lane.b32.xlu1 %v515_v27, %s4872_s13  ;;  %v552_v54 = vor.u32 %v551_v35, %v547_v33  ;;  %v543_v35 = vshrl.u32 %v5159_v34, 16 }
  0x93   : > { %v596_v38 = vpop.permute.xlu0 %595 }
  0x94   : > { %v5165_v42 = vpop.permute.xlu1 %593  ;;  %v1000_v9 = vsel %vm994_vm3, %v4959_v1, %v596_v38 }
  0x95   : > { %676 = vrot.lane.b32.xlu0 %v5040_v50, %s4871_s12  ;;  %v1041_v1 = vsel %vm1035_vm4, %v1000_v9, %v667_v37  ;;  %v554_v37 = vshll.u32 %v5233_v23, 16 }
  0x96   : > { %730 = vrot.lane.b32.xlu1 %v4801_v31, %s4869_s10 }
  0x97   : > { %v766_v43 = vpop.permute.xlu0 %765  ;;  %v5264_v55 = vrot.slane %v554_v37, 1 }
  0x98   : > { %v5172_v46 = vpop.permute.xlu1 %769 }
  0x99   : > { %824 = vrot.lane.b32.xlu0 %v649_v25, %s4870_s11 }
  0x9a   : > { %680 = vrot.lane.b32.xlu1 %v5089_v10, %s4871_s12 }
  0x9b   : > { %v5177_v47 = vpop.permute.xlu0 %812 }
  0x9c   : > { %v857_v50 = vpop.permute.xlu1 %856 }
  0x9d   : > { %724 = vrot.lane.b32.xlu0 %v5055_v53, %s4869_s10  ;;  %v1078_v53 = vsel %vm1076_vm5, %v1037_v56, %v711_v29  ;;  %v1082_v29 = vsel %vm1076_vm5, %v1041_v1, %v5150_v28 }
  0x9e   : > { %785 = vrot.lane.b32.xlu1 %v5181_v48, %s4873_s14  ;;  %v1119_v63 = vsel %vm1117_vm6, %v1078_v53, %v766_v43  ;;  %v1123_v28 = vsel %vm1117_vm6, %v1082_v29, %v5172_v46 }
  0x9f   : > { %v5190_v57 = vpop.permute.xlu0 %664  ;;  %v1160_v11 = vsel %vm6850_vm7, %v1119_v63, %v809_v30  ;;  %v1164_v51 = vsel %vm6850_vm7, %v1123_v28, %v5177_v47 }
  0xa0   : > { %v5195_v3 = vpop.permute.xlu1 %860  ;;  %v1201_v16 = vsel %vm1199_vm8, %v1160_v11, %v857_v50 }
  0xa1   : > { %872 = vrot.lane.b32.xlu0 %v4801_v31, %s4874_s15  ;;  %v1205_v60 = vsel %vm1199_vm8, %v1164_v51, %v5195_v3 }
  0xa2   : > { %728 = vrot.lane.b32.xlu1 %v5103_v13, %s4869_s10 }
  0xa3   : > { %v912_v4 = vpop.permute.xlu0 %911 }
  0xa4   : > { %v5209_v8 = vpop.permute.xlu1 %712  ;;  %v1242_v20 = vsel %vm6853_vm9, %v1201_v16, %v912_v4 }
  0xa5   : > { %779 = vrot.lane.b32.xlu0 %v515_v27, %s4873_s14 }
  0xa6   : > { %828 = vrot.lane.b32.xlu1 %v5207_v5, %s4870_s11 }
  0xa7   : > { %v916_v17 = vpop.permute.xlu0 %915 }
  0xa8   : > { %v955_v21 = vpop.permute.xlu1 %954  ;;  %v1246_v47 = vsel %vm6853_vm9, %v1205_v60, %v916_v17 }
  0xa9   : > { %v1283_v22 = vsel %vm6852_vm10, %v1242_v20, %v955_v21  ;;  %927 = vrot.lane.b32.xlu0 %v5181_v48, %s4875_s16 }
  0xaa   : > { %v1342_v25 = vcombine.high %v1283_v22, %v1283_v22  ;;  %v1349_v26 = vrot.slane %v1283_v22, %v5218_v14  ;;  %783 = vrot.lane.b32.xlu1 %v5221_v6, %s4873_s14 }
  0xab   : > { %v5239_v27 = vpop.permute.xlu0 %599 }
  0xac   : > { %v1356_v30 = vrot.slane %v1342_v25, %v5218_v14  ;;  %v1357_v31 = vcombine.high %v1349_v26, %v1349_v26  ;;  %v5244_v32 = vpop.permute.xlu1 %767  ;;  %v1365_v39 = vrot.slane %v1349_v26, %v5218_v14  ;;  %v653_v25 = vrot.slane %v5225_v18, 1 }
  0xad   : > { %822 = vrot.lane.b32.xlu0 %v5089_v10, %s4870_s11  ;;  %v5299_v26 = vrot.slane %v5233_v23, 1 }
  0xae   : > { %v1358_v38 = vcombine.high %v1356_v30, %v1356_v30  ;;  %v1379_v40 = vrot.slane %v1357_v31, %v5218_v14  ;;  %876 = vrot.lane.b32.xlu1 %v5225_v18, %s4874_s15  ;;  %v1372_v43 = vrot.slane %v1356_v30, %v5218_v14 }
  0xaf   : > { %v959_v41 = vpop.permute.xlu0 %958 }
  0xb0   : > { %v1386_v10 = vrot.slane %v1358_v38, %v5218_v14  ;;  %v1984_v44 = vcombine.low %v1365_v39, %v1379_v40  ;;  %v4577_v49 = vcombine.high %v1365_v39, %v1379_v40  ;;  %v5258_v50 = vpop.permute.xlu1 %603  ;;  %v1287_v16 = vsel %vm6852_vm10, %v1246_v47, %v959_v41 }
  0xb1   : > { %970 = vrot.lane.b32.xlu0 %v5207_v5, %s4876_s17  ;;  %v1405_v20 = vcombine.high %v1287_v16, %v1287_v16  ;;  %v1412_v21 = vrot.slane %v1287_v16, %v5218_v14  ;;  %v998_v41 = vsel %vm994_vm3, %v4977_v7, %v5165_v42 }
  0xb2   : > { %v1986_v56 = vcombine.low %v1372_v43, %v1386_v10  ;;  %v4578_v46 = vcombine.high %v1372_v43, %v1386_v10  ;;  %615 = vrot.lane.b32.xlu1 %v5181_v48, %s4872_s13  ;;  %v1994_v58 = vrot.slane %v1984_v44, %v5218_v14  ;;  %v2001_v53 = vrot.slane %v4577_v49, %v5218_v14 }
  0xb3   : > { %v5272_v62 = vpop.permute.xlu0 %670  ;;  %v5284_v48 = vsel %vm440_vm1, %v552_v54, %v5264_v55  ;;  %v1419_v30 = vrot.slane %v1405_v20, %v5218_v14  ;;  %v1420_v31 = vcombine.high %v1412_v21, %v1412_v21  ;;  %v5324_v43 = vor.u32 %v543_v35, %v5170_v45 }
  0xb4   : > { %v811_v63 = vpop.permute.xlu1 %810  ;;  %v2008_v4 = vrot.slane %v1986_v56, %v5218_v14  ;;  %v2015_v9 = vrot.slane %v4578_v46, %v5218_v14  ;;  %v2016_v11 = vcombine.low %v1994_v58, %v2001_v53  ;;  %v1039_v10 = vsel %vm1035_vm4, %v998_v41, %v5190_v57 }
  0xb5   : > { %826 = vrot.lane.b32.xlu0 %v5128_v24, %s4870_s11  ;;  %v1421_v38 = vcombine.high %v1419_v30, %v1419_v30  ;;  %v1435_v39 = vrot.slane %v1419_v30, %v5218_v14  ;;  %v1442_v40 = vrot.slane %v1420_v31, %v5218_v14  ;;  %v1080_v44 = vsel %vm1076_vm5, %v1039_v10, %v5209_v8  ;;  %v5378_v30 = vld [vmem:[%s4953_s9 + $0x60] sm:$0xff]  }
  0xb6   : > { %870 = vrot.lane.b32.xlu1 %v5103_v13, %s4874_s15  ;;  %v2017_v3 = vcombine.low %v2008_v4, %v2015_v9  ;;  %v2024_v22 = vrot.slane %v2016_v11, %v5218_v14  ;;  %v1428_v51 = vrot.slane %v1412_v21, %v5218_v14  ;;  %v1121_v57 = vsel %vm1117_vm6, %v1080_v44, %v5244_v32 }
  0xb7   : > { %v5286_v17 = vpop.permute.xlu0 %674  ;;  %v5336_v7 = vrot.slane %v1421_v38, %v5218_v14  ;;  %v1451_v42 = vcombine.high %v1435_v39, %v1435_v39  ;;  %v1452_v54 = vcombine.high %v1442_v40, %v1442_v40  ;;  %v562_v10 = vshrl.u32 %v5378_v30, 16 }
  0xb8   : > { %v5289_v1 = vpop.permute.xlu1 %718  ;;  %v2031_v19 = vrot.slane %v2017_v3, %v5218_v14  ;;  %v1450_v46 = vcombine.high %v1428_v51, %v1428_v51 }
  0xb9   : > { %931 = vrot.lane.b32.xlu0 %v5284_v48, %s4875_s16  ;;  %v2035_v58 = vcombine.low %v1452_v54, %v1435_v39  ;;  %v2036_v53 = vcombine.low %v5336_v7, %v1451_v42 }
  0xba   : > { %686 = vrot.lane.b32.xlu1 %v5207_v5, %s4871_s12  ;;  %v2032_v13 = vcombine.low %v2024_v22, %v2031_v19  ;;  %v5312_v5 = vsel %vm631_vm0, %v653_v25, %v5299_v26  ;;  %v2034_v9 = vcombine.low %v1442_v40, %v1450_v46  ;;  %v5391_v40 = vld [vmem:[%s4953_s9 + $0x68] ss:$0 sps:$4 sm:$0x33]   ;;  %v1004_v46 = vsel %vm994_vm3, %v4956_v0, %v5239_v27 }
  0xbb   : > { %v859_v29 = vpop.permute.xlu0 %858  ;;  %v2057_v11 = vrot.slane %v2035_v58, %v5218_v14  ;;  %v2064_v16 = vrot.slane %v2036_v53, %v5218_v14  ;;  %v1045_v58 = vsel %vm1035_vm4, %v1004_v46, %v5272_v62 }
  0xbc   : > { %v5302_v33 = vpop.permute.xlu1 %722  ;;  %4690 = vmatprep.mubr.msk.bf16.mxu0 %vm6851_vm11, %v2032_v13  ;;  %v2050_v22 = vrot.slane %v2034_v9, %v5218_v14 }
  0xbd   : > { %874 = vrot.lane.b32.xlu0 %v5159_v34, %s4874_s15  ;;  %v2066_v25 = vcombine.low %v2057_v11, %v2064_v16 }
  0xbe   : > { %925 = vrot.lane.b32.xlu1 %v5221_v6, %s4875_s16 }
  0xbf   : > { %v5314_v37 = vpop.permute.xlu0 %773  ;;  %v2080_v39 = vrot.slane %v2066_v25, %v5218_v14 }
  0xc0   : > { %v914_v28 = vpop.permute.xlu1 %913 }
  0xc1   : > { %974 = vrot.lane.b32.xlu0 %v5312_v5, %s4876_s17 }
  0xc2   : > { %734 = vrot.lane.b32.xlu1 %v5225_v18, %s4869_s10  ;;  %v1162_v18 = vsel %vm6850_vm7, %v1121_v57, %v811_v63 }
  0xc3   : > { %v5332_v49 = vpop.permute.xlu0 %597  ;;  %v1203_v8 = vsel %vm1199_vm8, %v1162_v18, %v859_v29 }
  0xc4   : > { %v5338_v45 = vpop.permute.xlu1 %777  ;;  %v1244_v60 = vsel %vm6853_vm9, %v1203_v8, %v914_v28 }
  0xc5   : > { %929 = vrot.lane.b32.xlu0 %v5324_v43, %s4875_s16 }
  0xc6   : > { %968 = vrot.lane.b32.xlu1 %v5128_v24, %s4876_s17 }
  0xc7   : > { %v5348_v56 = vpop.permute.xlu0 %816 }
  0xc8   : > { %v957_v47 = vpop.permute.xlu1 %956 }
  0xc9   : > { %v1285_v32 = vsel %vm6852_vm10, %v1244_v60, %v957_v47  ;;  %613 = vrot.lane.b32.xlu0 %v5221_v6, %s4872_s13  ;;  %v1086_v47 = vsel %vm1076_vm5, %v1045_v58, %v5289_v1  ;;  %v5440_v1 = vrot.slane %v5391_v40, 1 }
  0xca   : > { %v1397_v63 = vrot.slane %v1285_v32, %v5218_v14  ;;  %789 = vrot.lane.b32.xlu1 %v5284_v48, %s4873_s14  ;;  %v1127_v0 = vsel %vm1117_vm6, %v1086_v47, %v5314_v37  ;;  %v573_v47 = vshrl.u32 %v5391_v40, 16 }
  0xcb   : > { %v5358_v4 = vpop.permute.xlu0 %601  ;;  %v1168_v62 = vsel %vm6850_vm7, %v1127_v0, %v5348_v56  ;;  %v1008_v56 = vsel %vm994_vm3, %v5009_v36, %v5258_v50 }
  0xcc   : > { %v1404_v3 = vrot.slane %v1397_v63, %v5218_v14  ;;  %v5363_v20 = vpop.permute.xlu1 %668  ;;  %v1049_v16 = vsel %vm1035_vm4, %v1008_v56, %v5286_v17 }
  0xcd   : > { %972 = vrot.lane.b32.xlu0 %v5193_v59, %s4876_s17 }
  0xce   : > { %v2033_v6 = vcombine.low %v1404_v3, %v1428_v51  ;;  %617 = vrot.lane.b32.xlu1 %v5324_v43, %s4872_s13  ;;  %v569_v51 = vshll.u32 %v5391_v40, 16 }
  0xcf   : > { %v5369_v21 = vpop.permute.xlu0 %820 }
  0xd0   : > { %v2043_v19 = vrot.slane %v2033_v6, %v5218_v14  ;;  %v865_v13 = vpop.permute.xlu1 %864  ;;  %v5410_v18 = vrot.slane %v569_v51, 1  ;;  %v1090_v6 = vsel %vm1076_vm5, %v1049_v16, %v5302_v33  ;;  %v1002_v51 = vsel %vm994_vm3, %v4964_v2, %v5332_v49 }
  0xd1   : > { %619 = vrot.lane.b32.xlu0 %v5284_v48, %s4872_s13  ;;  %v1131_v36 = vsel %vm1117_vm6, %v1090_v6, %v5338_v45 }
  0xd2   : > { %v2065_v29 = vcombine.low %v2043_v19, %v2050_v22  ;;  %684 = vrot.lane.b32.xlu1 %v5128_v24, %s4871_s12  ;;  %v564_v24 = vshll.u32 %v5378_v30, 16  ;;  %v1172_v17 = vsel %vm6850_vm7, %v1131_v36, %v5369_v21  ;;  %v5482_v21 = vld [vmem:[%s4953_s9 + $0x74] ss:$0 sps:$4 sm:$0x33]   ;;  %v1006_v36 = vsel %vm994_vm3, %v4988_v15, %v5358_v4 }
  0xd3   : > { %v5380_v31 = vpop.permute.xlu0 %672 }
  0xd4   : > { %v5382_v35 = vpop.permute.xlu1 %716  ;;  %v2073_v38 = vrot.slane %v2065_v29, %v5218_v14  ;;  %v566_v44 = vrot.slane %v564_v24, 1 }
  0xd5   : > { %832 = vrot.lane.b32.xlu0 %v5312_v5, %s4870_s11 }
  0xd6   : > { %688 = vrot.lane.b32.xlu1 %v5193_v59, %s4871_s12  ;;  %v2081_v48 = vcombine.low %v2073_v38, %v2080_v39  ;;  %v567_v57 = vor.u32 %v566_v44, %v562_v10 }
  0xd7   : > { %v869_v28 = vpop.permute.xlu0 %868 }
  0xd8   : > { %v920_v41 = vpop.permute.xlu1 %919  ;;  %4691 = vmatmul.mubr.msk.bf16.vlgmr.msra.gmra.mrb[0].mxu0 %vm6851_vm11, %v2081_v48  ;;  %v572_v60 = vsel %vm440_vm1, %v567_v57, %v5410_v18 }
  0xd9   : > { %690 = vrot.lane.b32.xlu0 %v5312_v5, %s4871_s12  ;;  %v558_v5 = vshrl.u32 %v5233_v23, 16 }
  0xda   : > { %732 = vrot.lane.b32.xlu1 %v5159_v34, %s4869_s10 }
  0xdb   : > { %v5401_v42 = vpop.permute.xlu0 %720  ;;  %v5422_v53 = vor.u32 %v558_v5, %v5264_v55  ;;  %v1209_v55 = vsel %vm1199_vm8, %v1168_v62, %v865_v13  ;;  %v5468_v13 = vld [vmem:[%s4953_s9 + $0x6c] sm:$0xff]   ;;  %v1043_v5 = vsel %vm1035_vm4, %v1002_v51, %v5363_v20 }
  0xdc   : > { %v5403_v54 = vpop.permute.xlu1 %771  ;;  %v1250_v63 = vsel %vm6853_vm9, %v1209_v55, %v920_v41  ;;  %v579_v48 = vshll.u32 %v5468_v13, 16  ;;  %v577_v57 = vshrl.u32 %v5468_v13, 16  ;;  %v1084_v46 = vsel %vm1076_vm5, %v1043_v5, %v5382_v35 }
  0xdd   : > { %880 = vrot.lane.b32.xlu0 %v5378_v30, %s4874_s15 }
  0xde   : > { %736 = vrot.lane.b32.xlu1 %v5233_v23, %s4869_s10 }
  0xdf   : > { %v924_v34 = vpop.permute.xlu0 %923 }
  0xe0   : > { %v963_v8 = vpop.permute.xlu1 %962 }
  0xe1   : > { %738 = vrot.lane.b32.xlu0 %v5378_v30, %s4869_s10  ;;  %v1291_v37 = vsel %vm6852_vm10, %v1250_v63, %v963_v8  ;;  %v584_v8 = vshll.u32 %v5482_v21, 16 }
  0xe2   : > { %787 = vrot.lane.b32.xlu1 %v5324_v43, %s4873_s14  ;;  %v656_v43 = vrot.slane %v5378_v30, 1  ;;  %v1468_v22 = vcombine.high %v1291_v37, %v1291_v37  ;;  %v1475_v45 = vrot.slane %v1291_v37, %v5218_v14 }
  0xe3   : > { %v5428_v32 = vpop.permute.xlu0 %775  ;;  %v5519_v63 = vrot.slane %v584_v8, 1 }
  0xe4   : > { %v815_v27 = vpop.permute.xlu1 %814  ;;  %v658_v3 = vsel %vm631_vm0, %v656_v43, %v5440_v1  ;;  %v1482_v33 = vrot.slane %v1468_v22, %v5218_v14  ;;  %v1483_v10 = vcombine.high %v1475_v45, %v1475_v45  ;;  %v1491_v55 = vrot.slane %v1475_v45, %v5218_v14 }
  0xe5   : > { %935 = vrot.lane.b32.xlu0 %v572_v60, %s4875_s16  ;;  %v5529_v22 = vor.u32 %v573_v47, %v5410_v18  ;;  %v1453_v18 = vcombine.high %v5336_v7, %v5336_v7 }
  0xe6   : > { %791 = vrot.lane.b32.xlu1 %v5422_v53, %s4873_s14  ;;  %v1484_v24 = vcombine.high %v1482_v33, %v1482_v33  ;;  %v1505_v20 = vrot.slane %v1483_v10, %v5218_v14  ;;  %v5510_v0 = vrot.slane %v1482_v33, %v5218_v14  ;;  %v1047_v33 = vsel %vm1035_vm4, %v1006_v36, %v5380_v31 }
  0xe7   : > { %v967_v9 = vpop.permute.xlu0 %966  ;;  %v1088_v4 = vsel %vm1076_vm5, %v1047_v33, %v5401_v42 }
  0xe8   : > { %v5444_v11 = vpop.permute.xlu1 %607  ;;  %v5501_v58 = vrot.slane %v1484_v24, %v5218_v14  ;;  %v4579_v16 = vcombine.high %v1491_v55, %v1505_v20  ;;  %v1129_v7 = vsel %vm1117_vm6, %v1088_v4, %v5428_v32 }
  0xe9   : > { %793 = vrot.lane.b32.xlu0 %v572_v60, %s4873_s14 }
  0xea   : > { %830 = vrot.lane.b32.xlu1 %v5193_v59, %s4870_s11  ;;  %v1213_v59 = vsel %vm1199_vm8, %v1172_v17, %v869_v28  ;;  %v2106_v24 = vrot.slane %v4579_v16, %v5218_v14 }
  0xeb   : > { %v5458_v19 = vpop.permute.xlu0 %818  ;;  %v1254_v25 = vsel %vm6853_vm9, %v1213_v59, %v924_v34  ;;  %v581_v34 = vrot.slane %v579_v48, 1 }
  0xec   : > { %v863_v50 = vpop.permute.xlu1 %862  ;;  %v1295_v38 = vsel %vm6852_vm10, %v1254_v25, %v967_v9  ;;  %v2085_v9 = vcombine.low %v5510_v0, %v5501_v58  ;;  %v2083_v25 = vcombine.low %v1491_v55, %v1505_v20  ;;  %v1170_v42 = vsel %vm6850_vm7, %v1129_v7, %v5458_v19  ;;  %v5593_v55 = vld [vmem:[%s4953_s9 + $0x78] sm:$0xff]  }
  0xed   : > { %978 = vrot.lane.b32.xlu0 %v658_v3, %s4876_s17  ;;  %v1538_v28 = vrot.slane %v1295_v38, %v5218_v14  ;;  %v1531_v35 = vcombine.high %v1295_v38, %v1295_v38  ;;  %v753_v36 = vshll.u32 %v5593_v55, 16 }
  0xee   : > { %623 = vrot.lane.b32.xlu1 %v572_v60, %s4872_s13  ;;  %v2113_v45 = vrot.slane %v2085_v9, %v5218_v14  ;;  %v2099_v5 = vrot.slane %v2083_v25, %v5218_v14 }
  0xef   : > { %v5472_v29 = vpop.permute.xlu0 %678  ;;  %v1546_v2 = vcombine.high %v1538_v28, %v1538_v28  ;;  %v1554_v17 = vrot.slane %v1538_v28, %v5218_v14 }
  0xf0   : > { %v5476_v39 = vpop.permute.xlu1 %866  ;;  %v2115_v32 = vcombine.low %v2106_v24, %v2113_v45  ;;  %v751_v45 = vshrl.u32 %v5593_v55, 16 }
  0xf1   : > { %834 = vrot.lane.b32.xlu0 %v5299_v26, %s4870_s11  ;;  %v1568_v37 = vrot.slane %v1546_v2, %v5218_v14  ;;  %v1576_v10 = vcombine.high %v1554_v17, %v1554_v17 }
  0xf2   : > { %836 = vrot.lane.b32.xlu1 %v658_v3, %s4870_s11 }
  0xf3   : > { %v918_v41 = vpop.permute.xlu0 %917  ;;  %v1578_v38 = vcombine.high %v1568_v37, %v1568_v37  ;;  %v2133_v20 = vcombine.low %v1568_v37, %v1576_v10 }
  0xf4   : > { %v5486_v44 = vpop.permute.xlu1 %611 }
  0xf5   : > { %878 = vrot.lane.b32.xlu0 %v5233_v23, %s4874_s15  ;;  %v1125_v23 = vsel %vm1117_vm6, %v1084_v46, %v5403_v54  ;;  %v582_v54 = vor.u32 %v581_v34, %v577_v57  ;;  %v1211_v57 = vsel %vm1199_vm8, %v1170_v42, %v5476_v39 }
  0xf6   : > { %694 = vrot.lane.b32.xlu1 %v658_v3, %s4871_s12  ;;  %v1166_v62 = vsel %vm6850_vm7, %v1125_v23, %v815_v27 }
  0xf7   : > { %v5503_v49 = vpop.permute.xlu0 %726  ;;  %v1207_v43 = vsel %vm1199_vm8, %v1166_v62, %v863_v50  ;;  %v5535_v50 = vrot.slane %v1531_v35, %v5218_v14  ;;  %v5549_v15 = vsel %vm440_vm1, %v582_v54, %v5519_v63  ;;  %v4580_v62 = vcombine.high %v5510_v0, %v5501_v58 }
  0xf8   : > { %v922_v60 = vpop.permute.xlu1 %921  ;;  %v1248_v27 = vsel %vm6853_vm9, %v1207_v43, %v918_v41  ;;  %v5590_v35 = vrot.slane %v5482_v21, 1  ;;  %v2129_v58 = vrot.slane %v2115_v32, %v5218_v14 }
  0xf9   : > { %882 = vrot.lane.b32.xlu0 %v5391_v40, %s4874_s15  ;;  %v5564_v41 = vrot.slane %v5535_v50, %v5218_v14  ;;  %v1252_v8 = vsel %vm6853_vm9, %v1211_v57, %v922_v60  ;;  %v659_v60 = vrot.slane %v5468_v13, 1 }
  0xfa   : > { %884 = vrot.lane.b32.xlu1 %v5468_v13, %s4874_s15 }
  0xfb   : > { %v961_v56 = vpop.permute.xlu0 %960  ;;  %v2134_v34 = vcombine.low %v1578_v38, %v5564_v41  ;;  %v661_v16 = vsel %vm631_vm0, %v659_v60, %v5590_v35  ;;  %v755_v38 = vrot.slane %v753_v36, 1 }
  0xfc   : > { %v5525_v3 = vpop.permute.xlu1 %605  ;;  %v1289_v6 = vsel %vm6852_vm10, %v1248_v27, %v961_v56 }
  0xfd   : > { %v1460_v59 = vrot.slane %v1289_v6, %v5218_v14  ;;  %933 = vrot.lane.b32.xlu0 %v5422_v53, %s4875_s16  ;;  %v2162_v43 = vrot.slane %v2134_v34, %v5218_v14  ;;  %v5611_v6 = vld [vmem:[%s4953_s9 + $0x80] ss:$0 sps:$4 sm:$0x33]  }
  0xfe   : > { %742 = vrot.lane.b32.xlu1 %v5468_v13, %s4869_s10 }
  0xff   : > { %v1467_v48 = vrot.slane %v1460_v59, %v5218_v14  ;;  %v5555_v31 = vpop.permute.xlu0 %682  ;;  %v2141_v59 = vrot.slane %v4580_v62, %v5218_v14 }
 0x100   : > { %v5560_v28 = vpop.permute.xlu1 %781 }
 0x101   : > { %v2082_v51 = vcombine.low %v1453_v18, %v1467_v48  ;;  %937 = vrot.lane.b32.xlu0 %v5529_v22, %s4875_s16  ;;  %v758_v48 = vshll.u32 %v5611_v6, 16 }
 0x102   : > { %939 = vrot.lane.b32.xlu1 %v5549_v15, %s4875_s16 }
 0x103   : > { %v2092_v19 = vrot.slane %v2082_v51, %v5218_v14  ;;  %v965_v46 = vpop.permute.xlu0 %964 }
 0x104   : > { %v5578_v2 = vpop.permute.xlu1 %609  ;;  %v1293_v23 = vsel %vm6852_vm10, %v1252_v8, %v965_v46 }
 0x105   : > { %v2114_v47 = vcombine.low %v2092_v19, %v2099_v5  ;;  %v1523_v39 = vrot.slane %v1293_v23, %v5218_v14  ;;  %976 = vrot.lane.b32.xlu0 %v5299_v26, %s4876_s17  ;;  %v5633_v5 = vrot.slane %v758_v48, 1  ;;  %v5648_v19 = vrot.slane %v5611_v6, 1 }
 0x106   : > { %621 = vrot.lane.b32.xlu1 %v5422_v53, %s4872_s13  ;;  %v2155_v53 = vrot.slane %v2133_v20, %v5218_v14 }
 0x107   : > { %v1530_v54 = vrot.slane %v1523_v39, %v5218_v14  ;;  %v5597_v9 = vpop.permute.xlu0 %676  ;;  %v2122_v37 = vrot.slane %v2114_v47, %v5218_v14  ;;  %v588_v39 = vshrl.u32 %v5482_v21, 16 }
 0x108   : > { %v5601_v0 = vpop.permute.xlu1 %730  ;;  %v2164_v25 = vcombine.low %v2155_v53, %v2162_v43  ;;  %v1012_v43 = vsel %vm994_vm3, %v5049_v52, %v5444_v11 }
 0x109   : > { %v2132_v27 = vcombine.low %v1530_v54, %v1554_v17  ;;  %797 = vrot.lane.b32.xlu0 %v5549_v15, %s4873_s14  ;;  %v2130_v56 = vcombine.low %v2122_v37, %v2129_v58  ;;  %v5673_v37 = vld [vmem:[%s4953_s9 + $0x84] sm:$0xff]   ;;  %v1053_v58 = vsel %vm1035_vm4, %v1012_v43, %v5472_v29 }
 0x10a   : > { %980 = vrot.lane.b32.xlu1 %v5440_v1, %s4876_s17  ;;  %v2178_v10 = vrot.slane %v2164_v25, %v5218_v14  ;;  %v899_v29 = vshll.u32 %v5673_v37, 16 }
 0x10b   : > { %v2148_v33 = vrot.slane %v2132_v27, %v5218_v14  ;;  %4694 = vmatprep.mubr.msk.bf16.mxu0 %vm6851_vm11, %v2130_v56  ;;  %v825_v17 = vpop.permute.xlu0 %824  ;;  %v1094_v27 = vsel %vm1076_vm5, %v1053_v58, %v5503_v49  ;;  %v5691_v56 = vld [vmem:[%s4953_s9 + $0x8c] ss:$0 sps:$4 sm:$0x33]  }
 0x10c   : > { %v5617_v18 = vpop.permute.xlu1 %680 }
 0x10d   : > { %v2163_v4 = vcombine.low %v2141_v59, %v2148_v33  ;;  %982 = vrot.lane.b32.xlu0 %v661_v16, %s4876_s17  ;;  %v897_v59 = vshrl.u32 %v5673_v37, 16  ;;  %v901_v33 = vrot.slane %v899_v29, 1 }
 0x10e   : > { %692 = vrot.lane.b32.xlu1 %v5299_v26, %s4871_s12  ;;  %v756_v26 = vor.u32 %v755_v38, %v751_v45 }
 0x10f   : > { %v5624_v24 = vpop.permute.xlu0 %724  ;;  %v2171_v7 = vrot.slane %v2163_v4, %v5218_v14  ;;  %v1016_v4 = vsel %vm994_vm3, %v5097_v12, %v5486_v44 }
 0x110   : > { %v5628_v42 = vpop.permute.xlu1 %785  ;;  %v761_v34 = vsel %vm440_vm1, %v756_v26, %v5633_v5  ;;  %v1057_v38 = vsel %vm1035_vm4, %v1016_v4, %v5555_v31 }
 0x111   : > { %840 = vrot.lane.b32.xlu0 %v661_v16, %s4870_s11  ;;  %v2179_v51 = vcombine.low %v2171_v7, %v2178_v10  ;;  %v1098_v7 = vsel %vm1076_vm5, %v1057_v38, %v5601_v0  ;;  %v951_v0 = vrot.slane %v5673_v37, 1 }
 0x112   : > { %740 = vrot.lane.b32.xlu1 %v5391_v40, %s4869_s10  ;;  %v805_v40 = vrot.slane %v5593_v55, 1  ;;  %v1139_v12 = vsel %vm1117_vm6, %v1098_v7, %v5628_v42 }
 0x113   : > { %4695 = vmatmul.mubr.msk.bf16.gmra.mrb[4].mxu0 %vm6851_vm11, %v2179_v51  ;;  %v873_v57 = vpop.permute.xlu0 %872  ;;  %v902_v51 = vor.u32 %v901_v33, %v897_v59 }
 0x114   : > { %v5636_v32 = vpop.permute.xlu1 %728  ;;  %v807_v20 = vsel %vm631_vm0, %v805_v40, %v5648_v19  ;;  %v4819_v40 = vld [vmem:[%s4953_s9 + $0x2c] ss:$0 sps:$4 sm:$0x33]  }
 0x115   : > { %888 = vrot.lane.b32.xlu0 %v5593_v55, %s4874_s15  ;;  %v1010_v42 = vsel %vm994_vm3, %v4819_v40, %v5525_v3 }
 0x116   : > { %795 = vrot.lane.b32.xlu1 %v5529_v22, %s4873_s14 }
 0x117   : > { %v5644_v8 = vpop.permute.xlu0 %779 }
 0x118   : > { %v829_v46 = vpop.permute.xlu1 %828 }
 0x119   : > { %943 = vrot.lane.b32.xlu0 %v761_v34, %s4875_s16 }
 0x11a   : > { %627 = vrot.lane.b32.xlu1 %v5549_v15, %s4872_s13  ;;  %v5667_v15 = vor.u32 %v588_v39, %v5519_v63  ;;  %v1135_v63 = vsel %vm1117_vm6, %v1094_v27, %v5560_v28  ;;  %v1547_v39 = vcombine.high %v5535_v50, %v5535_v50 }
 0x11b   : > { %v928_v23 = vpop.permute.xlu0 %927  ;;  %v1176_v52 = vsel %vm6850_vm7, %v1135_v63, %v825_v17  ;;  %v904_v17 = vshll.u32 %v5691_v56, 16 }
 0x11c   : > { %v5655_v47 = vpop.permute.xlu1 %783 }
 0x11d   : > { %838 = vrot.lane.b32.xlu0 %v5440_v1, %s4870_s11  ;;  %v5717_v26 = vrot.slane %v904_v17, 1 }
 0x11e   : > { %986 = vrot.lane.b32.xlu1 %v807_v20, %s4876_s17 }
 0x11f   : > { %v5661_v62 = vpop.permute.xlu0 %822 }
 0x120   : > { %v877_v60 = vpop.permute.xlu1 %876 }
 0x121   : > { %698 = vrot.lane.b32.xlu0 %v661_v16, %s4871_s12  ;;  %v1217_v16 = vsel %vm1199_vm8, %v1176_v52, %v873_v57 }
 0x122   : > { %886 = vrot.lane.b32.xlu1 %v5482_v21, %s4874_s15  ;;  %v1258_v36 = vsel %vm6853_vm9, %v1217_v16, %v928_v23  ;;  %v1577_v16 = vcombine.high %v5564_v41, %v5564_v41 }
 0x123   : > { %v971_v54 = vpop.permute.xlu0 %970 }
 0x124   : > { %v5677_v53 = vpop.permute.xlu1 %615  ;;  %v1299_v28 = vsel %vm6852_vm10, %v1258_v36, %v971_v54  ;;  %v4820_v36 = vld [vmem:[%s4953_s9 + $0x38] ss:$0 sps:$4 sm:$0x33]  }
 0x125   : > { %746 = vrot.lane.b32.xlu0 %v5593_v55, %s4869_s10  ;;  %v1601_v45 = vrot.slane %v1299_v28, %v5218_v14  ;;  %v1594_v48 = vcombine.high %v1299_v28, %v1299_v28 }
 0x126   : > { %941 = vrot.lane.b32.xlu1 %v5667_v15, %s4875_s16 }
 0x127   : > { %v5688_v11 = vpop.permute.xlu0 %826  ;;  %v1609_v57 = vcombine.high %v1601_v45, %v1601_v45  ;;  %v1617_v27 = vrot.slane %v1601_v45, %v5218_v14 }
 0x128   : > { %v871_v49 = vpop.permute.xlu1 %870 }
 0x129   : > { %801 = vrot.lane.b32.xlu0 %v761_v34, %s4873_s14  ;;  %v1608_v34 = vrot.slane %v1594_v48, %v5218_v14 }
 0x12a   : > { %984 = vrot.lane.b32.xlu1 %v5590_v35, %s4876_s17 }
 0x12b   : > { %v932_v55 = vpop.permute.xlu0 %931  ;;  %v1610_v58 = vcombine.high %v1608_v34, %v1608_v34 }
 0x12c   : > { %v5702_v25 = vpop.permute.xlu1 %686 }
 0x12d   : > { %625 = vrot.lane.b32.xlu0 %v5529_v22, %s4872_s13  ;;  %v1180_v22 = vsel %vm6850_vm7, %v1139_v12, %v829_v46  ;;  %v1638_v33 = vrot.slane %v1610_v58, %v5218_v14 }
 0x12e   : > { %844 = vrot.lane.b32.xlu1 %v807_v20, %s4870_s11  ;;  %v1221_v31 = vsel %vm1199_vm8, %v1180_v22, %v877_v60  ;;  %v907_v20 = vsel %vm440_vm1, %v902_v51, %v5717_v26  ;;  %v1051_v60 = vsel %vm1035_vm4, %v1010_v42, %v5597_v9  ;;  %v762_v51 = vshrl.u32 %v5611_v6, 16 }
 0x12f   : > { %v5715_v10 = vpop.permute.xlu0 %874  ;;  %v1262_v23 = vsel %vm6853_vm9, %v1221_v31, %v932_v55  ;;  %v1092_v3 = vsel %vm1076_vm5, %v1051_v60, %v5624_v24 }
 0x130   : > { %v926_v44 = vpop.permute.xlu1 %925  ;;  %v1133_v50 = vsel %vm1117_vm6, %v1092_v3, %v5644_v8 }
 0x131   : > { %696 = vrot.lane.b32.xlu0 %v5440_v1, %s4871_s12  ;;  %v952_v1 = vrot.slane %v5691_v56, 1  ;;  %v1174_v9 = vsel %vm6850_vm7, %v1133_v50, %v5661_v62  ;;  %v1014_v62 = vsel %vm994_vm3, %v4820_v36, %v5578_v2 }
 0x132   : > { %892 = vrot.lane.b32.xlu1 %v5673_v37, %s4874_s15  ;;  %v1631_v37 = vrot.slane %v1609_v57, %v5218_v14  ;;  %v1215_v8 = vsel %vm1199_vm8, %v1174_v9, %v871_v49  ;;  %v1055_v59 = vsel %vm1035_vm4, %v1014_v62, %v5617_v18  ;;  %v1624_v18 = vrot.slane %v1608_v34, %v5218_v14 }
 0x133   : > { %v975_v46 = vpop.permute.xlu0 %974  ;;  %v953_v52 = vsel %vm631_vm0, %v951_v0, %v952_v1  ;;  %v1256_v55 = vsel %vm6853_vm9, %v1215_v8, %v926_v44  ;;  %v1096_v41 = vsel %vm1076_vm5, %v1055_v59, %v5636_v32  ;;  %v908_v59 = vshrl.u32 %v5691_v56, 16 }
 0x134   : > { %v5740_v43 = vpop.permute.xlu1 %734  ;;  %v5743_v54 = vsel %vm6852_vm10, %v1262_v23, %v975_v46  ;;  %v2182_v28 = vcombine.low %v1617_v27, %v1631_v37  ;;  %v4581_v49 = vcombine.high %v1617_v27, %v1631_v37  ;;  %v1137_v38 = vsel %vm1117_vm6, %v1096_v41, %v5655_v47 }
 0x135   : > { %744 = vrot.lane.b32.xlu0 %v5482_v21, %s4869_s10  ;;  %v1664_v63 = vrot.slane %v5743_v54, %v5218_v14  ;;  %v1575_v21 = vrot.slane %v1547_v39, %v5218_v14  ;;  %v1178_v32 = vsel %vm6850_vm7, %v1137_v38, %v5688_v11  ;;  %v2229_v57 = vcombine.low %v1624_v18, %v1638_v33 }
 0x136   : > { %947 = vrot.lane.b32.xlu1 %v907_v20, %s4875_s16  ;;  %v2204_v44 = vrot.slane %v2182_v28, %v5218_v14  ;;  %v2211_v47 = vrot.slane %v4581_v49, %v5218_v14  ;;  %v1219_v31 = vsel %vm1199_vm8, %v1178_v32, %v5715_v10  ;;  %v4582_v0 = vcombine.high %v1624_v18, %v1638_v33 }
 0x137   : > { %v930_v24 = vpop.permute.xlu0 %929  ;;  %v1672_v2 = vcombine.high %v1664_v63, %v1664_v63  ;;  %v1680_v4 = vrot.slane %v1664_v63, %v5218_v14  ;;  %v2180_v12 = vcombine.low %v1575_v21, %v1577_v16  ;;  %v1579_v22 = vcombine.high %v1575_v21, %v1575_v21 }
 0x138   : > { %v969_v29 = vpop.permute.xlu1 %968  ;;  %v1260_v42 = vsel %vm6853_vm9, %v1219_v31, %v930_v24  ;;  %v2213_v60 = vcombine.low %v2204_v44, %v2211_v47  ;;  %v2239_v50 = vrot.slane %v2229_v57, %v5218_v14  ;;  %v2246_v58 = vrot.slane %v4582_v0, %v5218_v14  ;;  %v4821_v57 = vld [vmem:[%s4953_s9 + $0x48] sm:$0xff]  }
 0x139   : > { %799 = vrot.lane.b32.xlu0 %v5667_v15, %s4873_s14  ;;  %v1297_v17 = vsel %vm6852_vm10, %v1256_v55, %v969_v29  ;;  %v5800_v40 = vrot.slane %v1672_v2, %v5218_v14  ;;  %v1702_v11 = vcombine.high %v1680_v4, %v1680_v4  ;;  %v2190_v3 = vrot.slane %v2180_v12, %v5218_v14 }
 0x13a   : > { %990 = vrot.lane.b32.xlu1 %v953_v52, %s4876_s17  ;;  %v1586_v48 = vrot.slane %v1297_v17, %v5218_v14  ;;  %v2227_v21 = vrot.slane %v2213_v60, %v5218_v14  ;;  %v2261_v36 = vcombine.low %v2239_v50, %v2246_v58  ;;  %v910_v2 = vor.u32 %v908_v59, %v5717_v26  ;;  %v4822_v50 = vld [vmem:[%s4953_s9 + $0x44] ss:$0 sps:$4 sm:$0x33]  }
 0x13b   : > { %v5779_v45 = vpop.permute.xlu0 %613  ;;  %v2232_v9 = vcombine.low %v5800_v40, %v1702_v11  ;;  %v1020_v31 = vsel %vm994_vm3, %v4821_v57, %v5677_v53  ;;  %v1657_v0 = vcombine.high %v5743_v54, %v5743_v54 }
 0x13c   : > { %v5785_v7 = vpop.permute.xlu1 %789  ;;  %v1593_v34 = vrot.slane %v1586_v48, %v5218_v14  ;;  %v2269_v33 = vrot.slane %v2261_v36, %v5218_v14  ;;  %v1018_v58 = vsel %vm994_vm3, %v4822_v50, %v5779_v45 }
 0x13d   : > { %842 = vrot.lane.b32.xlu0 %v5590_v35, %s4870_s11  ;;  %v2260_v8 = vrot.slane %v2232_v9, %v5218_v14  ;;  %v1704_v9 = vcombine.high %v5800_v40, %v5800_v40  ;;  %v4823_v40 = vld [vmem:[%s4953_s9 + $0x50] ss:$0 sps:$4 sm:$0x33]  }
 0x13e   : > { %629 = vrot.lane.b32.xlu1 %v5667_v15, %s4872_s13  ;;  %v2181_v46 = vcombine.low %v1579_v22, %v1593_v34  ;;  %v764_v15 = vor.u32 %v762_v51, %v5633_v5 }
 0x13f   : > { %v973_v23 = vpop.permute.xlu0 %972 }
 0x140   : > { %v5803_v20 = vpop.permute.xlu1 %617  ;;  %v1301_v39 = vsel %vm6852_vm10, %v1260_v42, %v973_v23  ;;  %v2197_v37 = vrot.slane %v2181_v46, %v5218_v14 }
 0x141   : > { %v1649_v10 = vrot.slane %v1301_v39, %v5218_v14  ;;  %890 = vrot.lane.b32.xlu0 %v5611_v6, %s4874_s15  ;;  %v1671_v39 = vrot.slane %v1657_v0, %v5218_v14 }
 0x142   : > { %700 = vrot.lane.b32.xlu1 %v5590_v35, %s4871_s12  ;;  %v2212_v24 = vcombine.low %v2190_v3, %v2197_v37 }
 0x143   : > { %v1656_v27 = vrot.slane %v1649_v10, %v5218_v14  ;;  %v5818_v63 = vpop.permute.xlu0 %619  ;;  %v1673_v60 = vcombine.high %v1671_v39, %v1671_v39 }
 0x144   : > { %v5820_v5 = vpop.permute.xlu1 %684  ;;  %v2220_v35 = vrot.slane %v2212_v24, %v5218_v14 }
 0x145   : > { %v2231_v52 = vcombine.low %v1656_v27, %v1680_v4  ;;  %945 = vrot.lane.b32.xlu0 %v764_v15, %s4875_s16  ;;  %v1059_v27 = vsel %vm1035_vm4, %v1018_v58, %v5820_v5  ;;  %v1022_v5 = vsel %vm994_vm3, %v4823_v40, %v5803_v20 }
 0x146   : > { %748 = vrot.lane.b32.xlu1 %v5611_v6, %s4869_s10  ;;  %v2228_v28 = vcombine.low %v2220_v35, %v2227_v21  ;;  %v1701_v21 = vrot.slane %v1673_v60, %v5218_v14 }
 0x147   : > { %v2253_v29 = vrot.slane %v2231_v52, %v5218_v14  ;;  %v833_v16 = vpop.permute.xlu0 %832 }
 0x148   : > { %v5829_v62 = vpop.permute.xlu1 %688  ;;  %4698 = vmatprep.mubr.msk.bf16.mxu0 %vm6851_vm11, %v2228_v28 }
 0x149   : > { %v2262_v55 = vcombine.low %v2253_v29, %v2260_v8  ;;  %988 = vrot.lane.b32.xlu0 %v5648_v19, %s4876_s17  ;;  %v1063_v59 = vsel %vm1035_vm4, %v1022_v5, %v5829_v62 }
 0x14a   : > { %803 = vrot.lane.b32.xlu1 %v764_v15, %s4873_s14 }
 0x14b   : > { %v5836_v6 = vpop.permute.xlu0 %690  ;;  %v2276_v49 = vrot.slane %v2262_v55, %v5218_v14 }
 0x14c   : > { %v733_v17 = vpop.permute.xlu1 %732 }
 0x14d   : > { %846 = vrot.lane.b32.xlu0 %v5648_v19, %s4870_s11  ;;  %v2277_v41 = vcombine.low %v2269_v33, %v2276_v49  ;;  %v1100_v24 = vsel %vm1076_vm5, %v1059_v27, %v733_v17 }
 0x14e   : > { %894 = vrot.lane.b32.xlu1 %v5691_v56, %s4874_s15  ;;  %v1061_v56 = vsel %vm1035_vm4, %v1020_v31, %v5702_v25 }
 0x14f   : > { %4699 = vmatmul.mubr.msk.bf16.gmra.mrb[8].mxu0 %vm6851_vm11, %v2277_v41  ;;  %v881_v4 = vpop.permute.xlu0 %880 }
 0x150   : > { %v737_v38 = vpop.permute.xlu1 %736 }
 0x151   : > { %949 = vrot.lane.b32.xlu0 %v910_v2, %s4875_s16  ;;  %v1104_v2 = vsel %vm1076_vm5, %v1063_v59, %v737_v38 }
 0x152   : > { %992 = vrot.lane.b32.xlu1 %v952_v1, %s4876_s17  ;;  %v1102_v1 = vsel %vm1076_vm5, %v1061_v56, %v5740_v43 }
 0x153   : > { %v5850_v18 = vpop.permute.xlu0 %738  ;;  %v1143_v11 = vsel %vm1117_vm6, %v1102_v1, %v5785_v7  ;;  %v1687_v7 = vrot.slane %v1671_v39, %v5218_v14  ;;  %v1705_v1 = vcombine.high %v1701_v21, %v1701_v21 }
 0x154   : > { %v788_v19 = vpop.permute.xlu1 %787  ;;  %v1184_v23 = vsel %vm6850_vm7, %v1143_v11, %v833_v16 }
 0x155   : > { %v1225_v53 = vsel %vm1199_vm8, %v1184_v23, %v881_v4  ;;  %v1703_v8 = vcombine.high %v1687_v7, %v1687_v7  ;;  %v1141_v29 = vsel %vm1117_vm6, %v1100_v24, %v788_v19  ;;  %v2278_v28 = vcombine.low %v1704_v9, %v1687_v7 }
 0x157   : > { %v936_v48 = vpop.permute.xlu0 %935  ;;  %v2279_v41 = vcombine.low %v1701_v21, %v1703_v8  ;;  %v2288_v31 = vrot.slane %v2278_v28, %v5218_v14 }
 0x158   : > { %v792_v51 = vpop.permute.xlu1 %791  ;;  %v1266_v46 = vsel %vm6853_vm9, %v1225_v53, %v936_v48 }
 0x159   : > { %v2295_v23 = vrot.slane %v2279_v41, %v5218_v14 }
 0x15b   : > { %v5852_v26 = vpop.permute.xlu0 %793  ;;  %v2310_v9 = vcombine.low %v2288_v31, %v2295_v23 }
 0x15c   : > { %v831_v12 = vpop.permute.xlu1 %830 }
 0x15d   : > { %v1182_v45 = vsel %vm6850_vm7, %v1141_v29, %v831_v12  ;;  %v4824_v12 = vld [vmem:[%s4953_s9 + $0x54] sm:$0xff]  }
 0x15e   : > { %v1024_v20 = vsel %vm994_vm3, %v4824_v12, %v5818_v63 }
 0x15f   : > { %v979_v44 = vpop.permute.xlu0 %978  ;;  %v1065_v38 = vsel %vm1035_vm4, %v1024_v20, %v5836_v6 }
 0x160   : > { %v5854_v32 = vpop.permute.xlu1 %623  ;;  %v1307_v43 = vsel %vm6852_vm10, %v1266_v46, %v979_v44  ;;  %v1145_v44 = vsel %vm1117_vm6, %v1104_v2, %v792_v51 }
 0x161   : > { %v1727_v54 = vrot.slane %v1307_v43, %v5218_v14  ;;  %v1720_v3 = vcombine.high %v1307_v43, %v1307_v43  ;;  %v1028_v41 = vsel %vm994_vm3, %v5378_v30, %v5854_v32 }
 0x163   : > { %v835_v22 = vpop.permute.xlu0 %834  ;;  %v1735_v52 = vcombine.high %v1727_v54, %v1727_v54  ;;  %v1734_v16 = vrot.slane %v1720_v3, %v5218_v14  ;;  %v1743_v62 = vrot.slane %v1727_v54, %v5218_v14 }
 0x164   : > { %v5856_v47 = vpop.permute.xlu1 %836  ;;  %v1186_v56 = vsel %vm6850_vm7, %v1145_v44, %v835_v22 }
 0x165   : > { %v1757_v33 = vrot.slane %v1735_v52, %v5218_v14  ;;  %v1736_v4 = vcombine.high %v1734_v16, %v1734_v16 }
 0x167   : > { %v879_v34 = vpop.permute.xlu0 %878  ;;  %v2281_v0 = vcombine.low %v1743_v62, %v1757_v33  ;;  %v1764_v46 = vrot.slane %v1736_v4, %v5218_v14  ;;  %v4583_v52 = vcombine.high %v1743_v62, %v1757_v33 }
 0x168   : > { %v5869_v42 = vpop.permute.xlu1 %694  ;;  %v1223_v55 = vsel %vm1199_vm8, %v1182_v45, %v879_v34  ;;  %v1106_v34 = vsel %vm1076_vm5, %v1065_v38, %v5850_v18  ;;  %v2318_v45 = vrot.slane %v2310_v9, %v5218_v14 }
 0x169   : > { %v1147_v53 = vsel %vm1117_vm6, %v1106_v34, %v5852_v26  ;;  %v2337_v28 = vrot.slane %v4583_v52, %v5218_v14  ;;  %v1069_v4 = vsel %vm1035_vm4, %v1028_v41, %v5869_v42 }
 0x16a   : > { %v1188_v39 = vsel %vm6850_vm7, %v1147_v53, %v5856_v47 }
 0x16b   : > { %v883_v25 = vpop.permute.xlu0 %882 }
 0x16c   : > { %v885_v10 = vpop.permute.xlu1 %884  ;;  %v1227_v63 = vsel %vm1199_vm8, %v1186_v56, %v883_v25  ;;  %v1750_v25 = vrot.slane %v1734_v16, %v5218_v14 }
 0x16d   : > { %v1229_v54 = vsel %vm1199_vm8, %v1188_v39, %v885_v10 }
 0x16e   : > { %v2328_v3 = vcombine.low %v1750_v25, %v1764_v46  ;;  %v4584_v8 = vcombine.high %v1750_v25, %v1764_v46 }
 0x16f   : > { %v934_v15 = vpop.permute.xlu0 %933 }
 0x170   : > { %v5878_v37 = vpop.permute.xlu1 %742  ;;  %v1264_v49 = vsel %vm6853_vm9, %v1223_v55, %v934_v15  ;;  %v2309_v15 = vrot.slane %v2281_v0, %v5218_v14  ;;  %v2344_v29 = vrot.slane %v2328_v3, %v5218_v14  ;;  %v2351_v59 = vrot.slane %v4584_v8, %v5218_v14 }
 0x171   : > { %v1110_v12 = vsel %vm1076_vm5, %v1069_v4, %v5878_v37 }
 0x172   : > { %v2359_v33 = vcombine.low %v2337_v28, %v2344_v29 }
 0x173   : > { %v938_v35 = vpop.permute.xlu0 %937 }
 0x174   : > { %v940_v36 = vpop.permute.xlu1 %939  ;;  %v1268_v6 = vsel %vm6853_vm9, %v1227_v63, %v938_v35  ;;  %v2367_v44 = vrot.slane %v2359_v33, %v5218_v14 }
 0x175   : > { %v1270_v60 = vsel %vm6853_vm9, %v1229_v54, %v940_v36 }
 0x177   : > { %v977_v17 = vpop.permute.xlu0 %976 }
 0x178   : > { %v5901_v19 = vpop.permute.xlu1 %621  ;;  %v1305_v48 = vsel %vm6852_vm10, %v1264_v49, %v977_v17 }
 0x179   : > { %v1712_v57 = vrot.slane %v1305_v48, %v5218_v14 }
 0x17b   : > { %v1719_v51 = vrot.slane %v1712_v57, %v5218_v14  ;;  %v798_v11 = vpop.permute.xlu0 %797 }
 0x17c   : > { %v981_v22 = vpop.permute.xlu1 %980  ;;  %v1151_v57 = vsel %vm1117_vm6, %v1110_v12, %v798_v11 }
 0x17d   : > { %v2280_v18 = vcombine.low %v1705_v1, %v1719_v51  ;;  %v1309_v43 = vsel %vm6852_vm10, %v1268_v6, %v981_v22  ;;  %v4825_v22 = vld [vmem:[%s4953_s9 + $0x5c] ss:$0 sps:$4 sm:$0x33]  }
 0x17e   : > { %v1775_v50 = vrot.slane %v1309_v43, %v5218_v14  ;;  %v1026_v39 = vsel %vm994_vm3, %v4825_v22, %v5901_v19 }
 0x17f   : > { %v2302_v26 = vrot.slane %v2280_v18, %v5218_v14  ;;  %v983_v7 = vpop.permute.xlu0 %982 }
 0x180   : > { %v693_v58 = vpop.permute.xlu1 %692  ;;  %v1311_v47 = vsel %vm6852_vm10, %v1270_v60, %v983_v7  ;;  %v1782_v16 = vrot.slane %v1775_v50, %v5218_v14 }
 0x181   : > { %v2311_v27 = vcombine.low %v2302_v26, %v2309_v15  ;;  %v1790_v24 = vrot.slane %v1311_v47, %v5218_v14  ;;  %v1783_v30 = vcombine.high %v1311_v47, %v1311_v47  ;;  %v1067_v43 = vsel %vm1035_vm4, %v1026_v39, %v693_v58 }
 0x183   : > { %v5935_v10 = vrot.slane %v1790_v24, %v5218_v14  ;;  %v841_v35 = vpop.permute.xlu0 %840  ;;  %v2325_v21 = vrot.slane %v2311_v27, %v5218_v14  ;;  %v1798_v56 = vcombine.high %v1790_v24, %v1790_v24  ;;  %v1797_v51 = vrot.slane %v1783_v30, %v5218_v14 }
 0x184   : > { %v741_v36 = vpop.permute.xlu1 %740  ;;  %v1192_v31 = vsel %vm6850_vm7, %v1151_v57, %v841_v35 }
 0x185   : > { %v2330_v40 = vcombine.low %v1782_v16, %v5935_v10  ;;  %v2326_v5 = vcombine.low %v2318_v45, %v2325_v21  ;;  %v1820_v23 = vrot.slane %v1798_v56, %v5218_v14  ;;  %v1799_v25 = vcombine.high %v1797_v51, %v1797_v51 }
 0x186   : > { %v1813_v15 = vrot.slane %v1797_v51, %v5218_v14  ;;  %v1108_v26 = vsel %vm1076_vm5, %v1067_v43, %v741_v36  ;;  %v1828_v19 = vcombine.high %v5935_v10, %v5935_v10  ;;  %v4878_v56 = vmov 1983009808  }
 0x187   : > { %v889_v55 = vpop.permute.xlu0 %888  ;;  %v2358_v49 = vrot.slane %v2330_v40, %v5218_v14  ;;  %4702 = vmatprep.mubr.msk.bf16.mxu0 %vm6851_vm11, %v2326_v5  ;;  %v1830_v60 = vcombine.high %v1820_v23, %v1820_v23  ;;  %v1827_v8 = vrot.slane %v1799_v25, %v5218_v14 }
 0x188   : > { %v796_v17 = vpop.permute.xlu1 %795  ;;  %v1233_v32 = vsel %vm1199_vm8, %v1192_v31, %v889_v55  ;;  %v1829_v29 = vcombine.high %v1813_v15, %v1813_v15  ;;  %v2376_v5 = vcombine.low %v1820_v23, %v1828_v19 }
 0x189   : > { %v2360_v2 = vcombine.low %v2351_v59, %v2358_v49  ;;  %v1149_v50 = vsel %vm1117_vm6, %v1108_v26, %v796_v17  ;;  %v2377_v16 = vcombine.low %v1830_v60, %v1813_v15 }
 0x18a   : > { %v2378_v17 = vcombine.low %v1827_v8, %v1829_v29 }
 0x18b   : > { %v944_v48 = vpop.permute.xlu0 %943  ;;  %v2374_v62 = vrot.slane %v2360_v2, %v5218_v14  ;;  %v2393_v41 = vrot.slane %v2377_v16, %v5218_v14  ;;  %v1831_v2 = vcombine.high %v1827_v8, %v1827_v8 }
 0x18c   : > { %v5953_v20 = vpop.permute.xlu1 %627  ;;  %v1274_v1 = vsel %vm6853_vm9, %v1233_v32, %v944_v48  ;;  %v2400_v30 = vrot.slane %v2378_v17, %v5218_v14 }
 0x18d   : > { %v2375_v38 = vcombine.low %v2367_v44, %v2374_v62  ;;  %v2386_v62 = vrot.slane %v2376_v5, %v5218_v14 }
 0x18f   : > { %v839_v42 = vpop.permute.xlu0 %838  ;;  %4703 = vmatmul.mubr.msk.bf16.gmra.mrb[12].mxu0 %vm6851_vm11, %v2375_v38 }
 0x190   : > { %v987_v37 = vpop.permute.xlu1 %986  ;;  %v1190_v58 = vsel %vm6850_vm7, %v1149_v50, %v839_v42 }
 0x191   : > { %v1315_v34 = vsel %vm6852_vm10, %v1274_v1, %v987_v37  ;;  %v2770_v1 = vunpack.c.l.s4 %v4878_v56  ;;  %v2408_v37 = vcombine.low %v2386_v62, %v2393_v41  ;;  %v4826_v62 = vld [vmem:[%s4953_s9 + $0x68] ss:$0 sps:$4 sm:$0x33]  }
 0x192   : > { %v1846_v0 = vcombine.high %v1315_v34, %v1315_v34  ;;  %v1853_v63 = vrot.slane %v1315_v34, %v5218_v14 }
 0x193   : > { %v699_v11 = vpop.permute.xlu0 %698  ;;  %v2771_v22 = vunpack.c.0.s8 %v2770_v1  ;;  %v2416_v39 = vrot.slane %v2408_v37, %v5218_v14 }
 0x194   : > { %v1860_v53 = vrot.slane %v1846_v0, %v5218_v14  ;;  %v887_v46 = vpop.permute.xlu1 %886  ;;  %v1861_v6 = vcombine.high %v1853_v63, %v1853_v63  ;;  %v1869_v27 = vrot.slane %v1853_v63, %v5218_v14  ;;  %v1032_v0 = vsel %vm994_vm3, %v5468_v13, %v5953_v20  ;;  %v6013_v13 = vld [vmem:[%s6845_s2] ss:$0 sm:$0xff] }
 0x195   : > { %v1231_v35 = vsel %vm1199_vm8, %v1190_v58, %v887_v46  ;;  %v1073_v51 = vsel %vm1035_vm4, %v1032_v0, %v699_v11  ;;  %v6021_v50 = vsub.s32 %v2771_v22, %v5201_v61 }
 0x196   : > { %v1862_v18 = vcombine.high %v1860_v53, %v1860_v53  ;;  %v1876_v47 = vrot.slane %v1860_v53, %v5218_v14  ;;  %v1883_v9 = vrot.slane %v1861_v6, %v5218_v14 }
 0x197   : > { %v747_v54 = vpop.permute.xlu0 %746 }
 0x198   : > { %v1890_v7 = vrot.slane %v1862_v18, %v5218_v14  ;;  %v942_v3 = vpop.permute.xlu1 %941  ;;  %v2425_v28 = vcombine.low %v1869_v27, %v1883_v9  ;;  %v4585_v40 = vcombine.high %v1869_v27, %v1883_v9  ;;  %v1114_v46 = vsel %vm1076_vm5, %v1073_v51, %v747_v54 }
 0x199   : > { %v1272_v36 = vsel %vm6853_vm9, %v1231_v35, %v942_v3 }
 0x19a   : > { %v2427_v24 = vcombine.low %v1876_v47, %v1890_v7  ;;  %v4586_v52 = vcombine.high %v1876_v47, %v1890_v7  ;;  %v2435_v12 = vrot.slane %v2425_v28, %v5218_v14  ;;  %v2442_v44 = vrot.slane %v4585_v40, %v5218_v14 }
 0x19b   : > { %v802_v21 = vpop.permute.xlu0 %801 }
 0x19c   : > { %v985_v45 = vpop.permute.xlu1 %984  ;;  %v2449_v59 = vrot.slane %v2427_v24, %v5218_v14  ;;  %v2456_v33 = vrot.slane %v4586_v52, %v5218_v14  ;;  %v2457_v34 = vcombine.low %v2435_v12, %v2442_v44  ;;  %v1155_v43 = vsel %vm1117_vm6, %v1114_v46, %v802_v21 }
 0x19d   : > { %v1313_v10 = vsel %vm6852_vm10, %v1272_v36, %v985_v45 }
 0x19e   : > { %v1838_v55 = vrot.slane %v1313_v10, %v5218_v14  ;;  %v2458_v38 = vcombine.low %v2449_v59, %v2456_v33  ;;  %v2465_v20 = vrot.slane %v2457_v34, %v5218_v14 }
 0x19f   : > { %v5988_v49 = vpop.permute.xlu0 %625 }
 0x1a0   : > { %v1845_v4 = vrot.slane %v1838_v55, %v5218_v14  ;;  %v845_v48 = vpop.permute.xlu1 %844  ;;  %v2472_v53 = vrot.slane %v2458_v38, %v5218_v14  ;;  %v6049_v38 = vadd.s32 4294967295, %v5201_v61 }
 0x1a1   : > { %v1196_v11 = vsel %vm6850_vm7, %v1155_v43, %v845_v48 }
 0x1a2   : > { %v2379_v57 = vcombine.low %v1831_v2, %v1845_v4  ;;  %v2473_v26 = vcombine.low %v2465_v20, %v2472_v53  ;;  %v6039_v2 = vstv %s4602_s19  ;;  %vm3198_vm14 = vcmp.ge.s32.totalorder %v6049_v38, 0 }
 0x1a3   : > { %v5995_v31 = vpop.permute.xlu0 %696  ;;  %vm3168_vm12 = vcmp.ge.s32.totalorder %v6039_v2, 0  ;;  %vm3178_vm13 = vcmp.lt.s32.totalorder %v6039_v2, 16 }
 0x1a4   : > { %v2407_v32 = vrot.slane %v2379_v57, %v5218_v14  ;;  %v893_v42 = vpop.permute.xlu1 %892  ;;  %v1030_v57 = vsel %vm994_vm3, %v4826_v62, %v5988_v49  ;;  %vm6094_vm15 = vmand %vm3168_vm12, %vm3178_vm13 }
 0x1a5   : > { %v1237_v54 = vsel %vm1199_vm8, %v1196_v11, %v893_v42  ;;  %v1071_v1 = vsel %vm1035_vm4, %v1030_v57, %v5995_v31 }
 0x1a6   : > { %v2409_v63 = vcombine.low %v2400_v30, %v2407_v32 }
 0x1a7   : > { %v6003_v23 = vpop.permute.xlu0 %744 }
 0x1a8   : > { %v948_v6 = vpop.permute.xlu1 %947  ;;  %v2423_v18 = vrot.slane %v2409_v63, %v5218_v14  ;;  %v1112_v49 = vsel %vm1076_vm5, %v1071_v1, %v6003_v23 }
 0x1a9   : > { %v1278_v7 = vsel %vm6853_vm9, %v1237_v54, %v948_v6 }
 0x1aa   : > { %v2424_v25 = vcombine.low %v2416_v39, %v2423_v18 }
 0x1ab   : > { %v4692_v15 = vpop.f32.mrb[0].mxu0  ;;  %v800_v60 = vpop.permute.xlu0 %799 }
 0x1ac   : > { %v2637_v3 = vadd.f32 %v4692_v15, %v6013_v13  ;;  %v991_v47 = vpop.permute.xlu1 %990  ;;  %v2628_v9 = vpop.f32.mrb[1].mxu0  ;;  %4706 = vmatprep.mubr.msk.bf16.mxu0 %vm6851_vm11, %v2424_v25  ;;  %v1153_v22 = vsel %vm1117_vm6, %v1112_v49, %v800_v60 }
 0x1ad   : > { %v1319_v19 = vsel %vm6852_vm10, %v1278_v7, %v991_v47  ;;  %v2629_v58 = vadd.f32 %v6013_v13, %v2628_v9  ;;  %v4693_v27 = vpop.f32.mrb[2].mxu0  ;;  %4707 = vmatmul.mubr.msk.bf16.gmra.mrb[16].mxu0 %vm6851_vm11, %v2473_v26 }
 0x1ae   : > { %v2724_v24 = vmax.f32 %v2637_v3, 0.0  ;;  %v1909_v52 = vcombine.high %v1319_v19, %v1319_v19  ;;  %v1916_v35 = vrot.slane %v1319_v19, %v5218_v14  ;;  %v2631_v21 = vpop.f32.mrb[3].mxu0  ;;  %v2640_v28 = vadd.f32 %v4693_v27, %v6013_v13  ;;  %v4827_v3 = vld [vmem:[%s4953_s9 + $0x74] ss:$0 sps:$4 sm:$0x33]  }
 0x1af   : > { %v2722_v8 = vmax.f32 %v2629_v58, 0.0  ;;  %v843_v29 = vpop.permute.xlu0 %842  ;;  %v2632_v12 = vadd.f32 %v6013_v13, %v2631_v21 }
 0x1b0   : > { %v2802_v16 = vcombine.high %v2724_v24, %v2724_v24  ;;  %v6030_v36 = vrot.slane %v2724_v24, %v6021_v50  ;;  %v1924_v45 = vcombine.high %v1916_v35, %v1916_v35  ;;  %v630_v40 = vpop.permute.xlu1 %629  ;;  %v1923_v55 = vrot.slane %v1909_v52, %v5218_v14 }
 0x1b1   : > { %v2768_v10 = vcombine.high %v2722_v8, %v2722_v8  ;;  %v2775_v33 = vrot.slane %v2722_v8, %v6021_v50  ;;  %v6042_v48 = vmax.f32 %v2640_v28, 0.0  ;;  %v6052_v32 = vrot.slane %v1916_v35, %v5218_v14 }
 0x1b2   : > { %v2816_v5 = vrot.slane %v2802_v16, %v6021_v50  ;;  %v2817_v59 = vcombine.high %v6030_v36, %v6030_v36  ;;  %v1946_v4 = vrot.slane %v1924_v45, %v5218_v14  ;;  %v1925_v30 = vcombine.high %v1923_v55, %v1923_v55 }
 0x1b3   : > { %v2782_v17 = vrot.slane %v2768_v10, %v6021_v50  ;;  %v891_v41 = vpop.permute.xlu0 %890  ;;  %v1939_v34 = vrot.slane %v1923_v55, %v5218_v14  ;;  %v2783_v0 = vcombine.high %v2775_v33, %v2775_v33  ;;  %v6062_v53 = vrot.slane %v6042_v48, %v6021_v50 }
 0x1b4   : > { %v701_v44 = vpop.permute.xlu1 %700  ;;  %v2818_v56 = vcombine.high %v2816_v5, %v2816_v5  ;;  %v3365_v37 = vcombine.low %v2817_v59, %v2816_v5  ;;  %v1956_v51 = vcombine.high %v1946_v4, %v1946_v4  ;;  %v2723_v46 = vmax.f32 %v2632_v12, 0.0 }
 0x1b5   : > { %v2784_v42 = vcombine.high %v2782_v17, %v2782_v17  ;;  %v1953_v39 = vrot.slane %v1925_v30, %v5218_v14  ;;  %v1954_v23 = vcombine.high %v6052_v32, %v6052_v32  ;;  %v1955_v11 = vcombine.high %v1939_v34, %v1939_v34 }
 0x1b6   : > { %v3366_v18 = vcombine.low %v2818_v56, %v6062_v53  ;;  %v2785_v43 = vcombine.high %v2723_v46, %v2723_v46  ;;  %v3373_v20 = vrot.slane %v3365_v37, %v6021_v50  ;;  %v3324_v25 = vcombine.low %v2775_v33, %v2783_v0 }
 0x1b7   : > { %v946_v63 = vpop.permute.xlu0 %945  ;;  %v3325_v31 = vcombine.low %v2782_v17, %v2784_v42  ;;  %v2792_v54 = vrot.slane %v2723_v46, %v6021_v50  ;;  %v2476_v26 = vcombine.low %v1956_v51, %v1939_v34  ;;  %v1034_v47 = vsel %vm994_vm3, %v4827_v3, %v630_v40 }
 0x1b8   : > { %v749_v6 = vpop.permute.xlu1 %748  ;;  %v3380_v7 = vrot.slane %v3366_v18, %v6021_v50  ;;  %v2799_v60 = vrot.slane %v2785_v43, %v6021_v50  ;;  %v1194_v27 = vsel %vm6850_vm7, %v1153_v22, %v843_v29  ;;  %v1075_v24 = vsel %vm1035_vm4, %v1034_v47, %v701_v44 }
 0x1b9   : > { %v3339_v19 = vrot.slane %v3325_v31, %v6021_v50  ;;  %v2800_v58 = vcombine.high %v2792_v54, %v2792_v54  ;;  %v1235_v21 = vsel %vm1199_vm8, %v1194_v27, %v891_v41  ;;  %v1116_v8 = vsel %vm1076_vm5, %v1075_v24, %v749_v6 }
 0x1ba   : > { %v6080_v52 = vcombine.low %v3373_v20, %v3380_v7  ;;  %v2801_v35 = vcombine.high %v2799_v60, %v2799_v60  ;;  %v2477_v16 = vcombine.low %v1953_v39, %v1955_v11  ;;  %v1276_v28 = vsel %vm6853_vm9, %v1235_v21, %v946_v63 }
 0x1bb   : > { %v989_v15 = vpop.permute.xlu0 %988  ;;  %v3341_v45 = vcombine.low %v2792_v54, %v2800_v58  ;;  %v3332_v5 = vrot.slane %v3324_v25, %v6021_v50  ;;  %v2475_v12 = vcombine.low %v1946_v4, %v1954_v23  ;;  %v2498_v30 = vrot.slane %v2476_v26, %v5218_v14 }
 0x1bc   : > { %v804_v9 = vpop.permute.xlu1 %803  ;;  %v3342_v55 = vcombine.low %v2799_v60, %v2801_v35  ;;  %v1317_v29 = vsel %vm6852_vm10, %v1276_v28, %v989_v15  ;;  %v2505_v42 = vrot.slane %v2477_v16, %v5218_v14  ;;  %v1957_v43 = vcombine.high %v1953_v39, %v1953_v39 }
 0x1bd   : > { %v1157_v40 = vsel %vm1117_vm6, %v1116_v8, %v804_v9  ;;  %v1901_v17 = vrot.slane %v1317_v29, %v5218_v14  ;;  %v3340_v44 = vcombine.low %v3332_v5, %v3339_v19  ;;  %v3349_v62 = vrot.slane %v3341_v45, %v6021_v50 }
 0x1be   : > { %v3356_v57 = vrot.slane %v3342_v55, %v6021_v50  ;;  %v2491_v31 = vrot.slane %v2475_v12, %v5218_v14  ;;  %v2507_v18 = vcombine.low %v2498_v30, %v2505_v42  ;;  %v3164_v60 = vadd.s32 16, %v5201_v61 }
 0x1bf   : > { %v847_v10 = vpop.permute.xlu0 %846  ;;  %v1908_v56 = vrot.slane %v1901_v17, %v5218_v14  ;;  %v2819_v39 = vcombine.high %v6042_v48, %v6042_v48  ;;  %v3152_v47 = vadd.s32 1, %v6039_v2  ;;  %v2834_v58 = vcombine.high %v6062_v53, %v6062_v53 }
 0x1c0   : > { %v1198_v59 = vsel %vm6850_vm7, %v1157_v40, %v847_v10  ;;  %v895_v33 = vpop.permute.xlu1 %894  ;;  %vm3201_vm7 = vmand %vm6094_vm15, %vm3198_vm14  ;;  %v3357_v4 = vcombine.low %v3349_v62, %v3356_v57  ;;  %v2521_v54 = vrot.slane %v2507_v18, %v5218_v14  ;;  %v6128_v3 = vadd.s32 4294967295, %v3164_v60 }
 0x1c1   : > { %v1239_v1 = vsel %vm1199_vm8, %v1198_v59, %v895_v33  ;;  %v2474_v63 = vcombine.low %v1908_v56, %v6052_v32  ;;  %v3764_v51 = vsel %vm3201_vm7, %v3340_v44, 0.0  ;;  %v2833_v19 = vrot.slane %v2819_v39, %v6021_v50 }
 0x1c2   : > { %v3765_v46 = vsel %vm6094_vm15, %v3357_v4, 0.0  ;;  %vm3233_vm7 = vcmp.lt.s32.totalorder %v6128_v3, 16  ;;  %vm3169_vm12 = vcmp.ge.s32.totalorder %v3152_v47, 0  ;;  %vm3179_vm13 = vcmp.lt.s32.totalorder %v3152_v47, 16 }
 0x1c3   : > { %v950_v37 = vpop.permute.xlu0 %949  ;;  %v6115_v22 = vpack.c.bf16 %v3765_v46, %v3764_v51  ;;  %v2484_v23 = vrot.slane %v2474_v63, %v5218_v14  ;;  %v3153_v8 = vadd.s32 2, %v6039_v2  ;;  %v3364_v53 = vrot.slane %v6030_v36, %v6021_v50 }
 0x1c4   : > { %v1280_v34 = vsel %vm6853_vm9, %v1239_v1, %v950_v37  ;;  %v993_v0 = vpop.permute.xlu1 %992  ;;  %v3382_v28 = vcombine.low %v2834_v58, %v2833_v19  ;;  %v2835_v5 = vcombine.high %v2833_v19, %v2833_v19 }
 0x1c5   : > { %v1321_v49 = vsel %vm6852_vm10, %v1280_v34, %v993_v0  ;;  %v2506_v11 = vcombine.low %v2484_v23, %v2491_v31  ;;  %vm6158_vm10 = vmand %vm3169_vm12, %vm3179_vm13  ;;  %vm3170_vm9 = vcmp.ge.s32.totalorder %v3153_v8, 0  ;;  %vm3180_vm13 = vcmp.lt.s32.totalorder %v3153_v8, 16 }
 0x1c6   : > { %v1964_v6 = vrot.slane %v1321_v49, %v5218_v14  ;;  %v3390_v42 = vrot.slane %v3382_v28, %v6021_v50  ;;  %vm6185_vm12 = vmand %vm6158_vm10, %vm3198_vm14 }
 0x1c7   : > { %v2514_v25 = vrot.slane %v2506_v11, %v5218_v14 }
 0x1c8   : > { %v1971_v20 = vrot.slane %v1964_v6, %v5218_v14 }
 0x1c9   : > { %v2522_v26 = vcombine.low %v2514_v25, %v2521_v54 }
 0x1ca   : > { %v2523_v32 = vcombine.low %v1957_v43, %v1971_v20 }
 0x1cb   : > { %4710 = vmatprep.mubr.msk.bf16.mxu0 %vm6851_vm11, %v2522_v26  ;;  %v3767_v26 = vsel %vm6185_vm12, %v6080_v52, 0.0 }
 0x1cc   : > { %v2530_v15 = vrot.slane %v2523_v32, %v5218_v14 }
 0x1ce   : > { %v2537_v7 = vrot.slane %v2530_v15, %v5218_v14 }
 0x1d0   : > { %4711 = vmatmul.mubr.msk.bf16.gmra.mrb[20].mxu0 %vm6851_vm11, %v2537_v7  ;;  %vm6147_vm11 = vmand %vm6094_vm15, %vm3233_vm7 }
 0x1d1   : > { %vm6168_vm15 = vmand %vm6158_vm10, %vm3233_vm7  ;;  %v3766_v51 = vsel %vm6147_vm11, %v3364_v53, 0.0 }
 0x1d2   : > { %v3795_v15 = vpack.c.bf16 %v3766_v51, %v3766_v51 }
 0x1e6   : > { %v4696_v9 = vpop.f32.mrb[4].mxu0 }
 0x1e7   : > { %v2653_v14 = vadd.f32 %v4696_v9, %v6013_v13  ;;  %v2644_v27 = vpop.f32.mrb[5].mxu0 }
 0x1e8   : > { %v2645_v24 = vadd.f32 %v6013_v13, %v2644_v27  ;;  %v4697_v35 = vpop.f32.mrb[6].mxu0  ;;  %v3942_v27 = vrot.slane %v6115_v22, 1 }
 0x1e9   : > { %v2728_v61 = vmax.f32 %v2653_v14, 0.0  ;;  %v2656_v48 = vadd.f32 %v4697_v35, %v6013_v13  ;;  %v2647_v21 = vpop.f32.mrb[7].mxu0 }
 0x1ea   : > { %v2726_v16 = vmax.f32 %v2645_v24, 0.0  ;;  %v2648_v45 = vadd.f32 %v6013_v13, %v2647_v21  ;;  %v3817_v24 = vshll.u32 %v6115_v22, 16 }
 0x1eb   : > { %v2870_v40 = vcombine.high %v2728_v61, %v2728_v61  ;;  %v2729_v10 = vmax.f32 %v2656_v48, 0.0  ;;  %v2877_v17 = vrot.slane %v2728_v61, %v6021_v50 }
 0x1ec   : > { %v2836_v55 = vcombine.high %v2726_v16, %v2726_v16  ;;  %v2843_v29 = vrot.slane %v2726_v16, %v6021_v50  ;;  %v2727_v59 = vmax.f32 %v2648_v45, 0.0  ;;  %v3943_v45 = vrot.slane %v3795_v15, 1 }
 0x1ed   : > { %v6153_v36 = vrot.slane %v2870_v40, %v6021_v50  ;;  %v2887_v12 = vcombine.high %v2729_v10, %v2729_v10  ;;  %v2894_v44 = vrot.slane %v2729_v10, %v6021_v50  ;;  %v2885_v6 = vcombine.high %v2877_v17, %v2877_v17 }
 0x1ee   : > { %v2850_v41 = vrot.slane %v2836_v55, %v6021_v50  ;;  %v2851_v57 = vcombine.high %v2843_v29, %v2843_v29  ;;  %v3383_v30 = vcombine.low %v2835_v5, %v2843_v29  ;;  %v2853_v4 = vcombine.high %v2727_v59, %v2727_v59 }
 0x1ef   : > { %v2886_v1 = vcombine.high %v6153_v36, %v6153_v36  ;;  %v6175_v37 = vrot.slane %v2887_v12, %v6021_v50  ;;  %v2902_v49 = vcombine.high %v2894_v44, %v2894_v44  ;;  %v2860_v23 = vrot.slane %v2727_v59, %v6021_v50 }
 0x1f0   : > { %v2852_v34 = vcombine.high %v2850_v41, %v2850_v41  ;;  %v3397_v0 = vrot.slane %v3383_v30, %v6021_v50  ;;  %v3405_v63 = vrot.slane %v2851_v57, %v6021_v50  ;;  %v2867_v54 = vrot.slane %v2853_v4, %v6021_v50 }
 0x1f1   : > { %v3447_v31 = vcombine.low %v2886_v1, %v2894_v44  ;;  %v3448_v32 = vcombine.low %v2902_v49, %v6175_v37  ;;  %v2868_v60 = vcombine.high %v2860_v23, %v2860_v23  ;;  %v3424_v39 = vcombine.low %v2877_v17, %v2885_v6 }
 0x1f2   : > { %v3398_v18 = vcombine.low %v3390_v42, %v3397_v0  ;;  %v3406_v43 = vcombine.low %v2850_v41, %v2852_v34  ;;  %v3769_v20 = vsel %vm6168_vm15, %v3405_v63, 0.0  ;;  %v2869_v9 = vcombine.high %v2867_v54, %v2867_v54 }
 0x1f3   : > { %v3797_v11 = vpack.c.bf16 %v3769_v20, %v3769_v20  ;;  %v3455_v25 = vrot.slane %v3447_v31, %v6021_v50  ;;  %v3462_v47 = vrot.slane %v3448_v32, %v6021_v50  ;;  %v3407_v14 = vcombine.low %v2860_v23, %v2868_v60 }
 0x1f4   : > { %v3768_v7 = vsel %vm6158_vm10, %v3398_v18, 0.0  ;;  %v3414_v58 = vrot.slane %v3406_v43, %v6021_v50  ;;  %v3423_v52 = vcombine.low %v2867_v54, %v2869_v9  ;;  %vm6213_vm10 = vmand %vm3170_vm9, %vm3180_vm13  ;;  %v3438_v28 = vrot.slane %v3424_v39, %v6021_v50 }
 0x1f5   : > { %v6201_v19 = vpack.c.bf16 %v3768_v7, %v3767_v26  ;;  %v6206_v35 = vcombine.low %v3455_v25, %v3462_v47  ;;  %v3946_v48 = vrot.slane %v3797_v11, 1  ;;  %v3421_v16 = vrot.slane %v3407_v14, %v6021_v50  ;;  %vm6228_vm9 = vmand %vm6213_vm10, %vm3198_vm14 }
 0x1f6   : > { %v3431_v40 = vrot.slane %v3423_v52, %v6021_v50  ;;  %v3446_v5 = vrot.slane %v6153_v36, %v6021_v50  ;;  %v3944_v29 = vsel %vm631_vm0, %v3942_v27, %v3943_v45  ;;  %v3819_v59 = vrot.slane %v3817_v24, 1  ;;  %vm3242_vm11 = vmand %vm6213_vm10, %vm3233_vm7 }
 0x1f7   : > { %3983 = vrot.lane.b32.xlu0 %v6201_v19, %s4869_s10  ;;  %v3945_v61 = vrot.slane %v6201_v19, 1  ;;  %v3829_v53 = vshll.u32 %v6201_v19, 16  ;;  %v3422_v55 = vcombine.low %v3414_v58, %v3421_v16  ;;  %v3815_v36 = vshrl.u32 %v6115_v22, 16 }
 0x1f8   : > { %v3439_v33 = vcombine.low %v3431_v40, %v3438_v28  ;;  %v3822_v12 = vshll.u32 %v3795_v15, 16  ;;  %v3827_v41 = vshrl.u32 %v6201_v19, 16  ;;  %v3834_v57 = vshll.u32 %v3797_v11, 16 }
 0x1f9   : > { %v3947_v10 = vsel %vm631_vm0, %v3945_v61, %v3946_v48  ;;  %v3831_v17 = vrot.slane %v3829_v53, 1  ;;  %v3770_v44 = vsel %vm6228_vm9, %v3422_v55, 0.0  ;;  %v3772_v30 = vsel %vm3242_vm11, %v3446_v5, 0.0 }
 0x1fa   : > { %3968 = vrot.lane.b32.xlu1 %v3947_v10, %s4871_s12  ;;  %v3771_v62 = vsel %vm6213_vm10, %v3439_v33, 0.0  ;;  %v3820_v56 = vor.u32 %v3819_v59, %v3815_v36  ;;  %v3824_v4 = vrot.slane %v3822_v12, 1  ;;  %v6250_v34 = vpack.c.bf16 %v3772_v30, %v3772_v30 }
 0x1fb   : > { %3966 = vrot.lane.b32.xlu0 %v3944_v29, %s4871_s12  ;;  %v6245_v42 = vpack.c.bf16 %v3771_v62, %v3770_v44  ;;  %v3832_v1 = vor.u32 %v3831_v17, %v3827_v41  ;;  %v3836_v0 = vrot.slane %v3834_v57, 1  ;;  %v3154_v23 = vadd.s32 3, %v6039_v2 }
 0x1fc   : > { %v3825_v63 = vsel %vm440_vm1, %v3820_v56, %v3824_v4  ;;  %v3949_v46 = vrot.slane %v6250_v34, 1  ;;  %v2903_v60 = vcombine.high %v6175_v37, %v6175_v37  ;;  %v3155_v16 = vadd.s32 4, %v6039_v2 }
 0x1fd   : > { %v3837_v49 = vsel %vm440_vm1, %v3832_v1, %v3836_v0  ;;  %v3948_v51 = vrot.slane %v6245_v42, 1  ;;  %vm3171_vm15 = vcmp.ge.s32.totalorder %v3154_v23, 0  ;;  %vm3181_vm12 = vcmp.lt.s32.totalorder %v3154_v23, 16 }
 0x1fe   : > { %3985 = vrot.lane.b32.xlu1 %v6245_v42, %s4869_s10  ;;  %vm6275_vm13 = vmand %vm3171_vm15, %vm3181_vm12  ;;  %v3841_v53 = vshll.u32 %v6245_v42, 16  ;;  %vm3172_vm9 = vcmp.ge.s32.totalorder %v3155_v16, 0  ;;  %vm3182_vm15 = vcmp.lt.s32.totalorder %v3155_v16, 16  ;;  %v3846_v57 = vshll.u32 %v6250_v34, 16 }
 0x1ff   : > { %4031 = vrot.lane.b32.xlu0 %v3947_v10, %s4870_s11  ;;  %v3950_v6 = vsel %vm631_vm0, %v3948_v51, %v3949_v46  ;;  %vm6286_vm10 = vmand %vm6275_vm13, %vm3198_vm14  ;;  %v3839_v4 = vshrl.u32 %v6245_v42, 16 }
 0x200   : > { %v3843_v44 = vrot.slane %v3841_v53, 1  ;;  %vm3245_vm11 = vmand %vm6275_vm13, %vm3233_vm7  ;;  %v3773_v62 = vsel %vm6286_vm10, %v6206_v35, 0.0  ;;  %v4816_v35 = vld [vmem:[%s6846_s3] sm:$0xff]  }
 0x201   : > { %vm6314_vm12 = vmand %vm3172_vm9, %vm3182_vm15  ;;  %4714 = vmatprep.subr.bf16.mxu1 %v4816_v35 }
 0x202   : > { %3912 = vrot.lane.b32.xlu1 %v3837_v49, %s4872_s13  ;;  %4715 = vmatpush3.bf16.msra.mxu1 %v4816_v35  ;;  %vm3248_vm10 = vmand %vm6314_vm12, %vm3233_vm7 }
 0x203   : > { %3910 = vrot.lane.b32.xlu0 %v3825_v63, %s4872_s13 }
 0x206   : > { %4033 = vrot.lane.b32.xlu1 %v3950_v6, %s4870_s11 }
 0x207   : > { %4048 = vrot.lane.b32.xlu0 %v6245_v42, %s4874_s15 }
 0x20b   : > { %4011 = vrot.lane.b32.xlu0 %v3837_v49, %s4873_s14 }
 0x20f   : > { %4096 = vrot.lane.b32.xlu0 %v3950_v6, %s4876_s17 }
 0x213   : > { %3970 = vrot.lane.b32.xlu0 %v3950_v6, %s4871_s12 }
 0x222   : > { %v4700_v31 = vpop.f32.mrb[8].mxu0 }
 0x223   : > { %v2669_v18 = vadd.f32 %v4700_v31, %v6013_v13  ;;  %v2660_v43 = vpop.f32.mrb[9].mxu0  ;;  %v3844_v31 = vor.u32 %v3843_v44, %v3839_v4 }
 0x224   : > { %v2661_v20 = vadd.f32 %v6013_v13, %v2660_v43  ;;  %v4701_v11 = vpop.f32.mrb[10].mxu0 }
 0x225   : > { %v2732_v32 = vmax.f32 %v2669_v18, 0.0  ;;  %v2663_v25 = vpop.f32.mrb[11].mxu0  ;;  %v2672_v63 = vadd.f32 %v4701_v11, %v6013_v13  ;;  %v3848_v18 = vrot.slane %v3846_v57, 1 }
 0x226   : > { %v2730_v54 = vmax.f32 %v2661_v20, 0.0  ;;  %v2664_v15 = vadd.f32 %v6013_v13, %v2663_v25  ;;  %v4817_v20 = vld [vmem:[%s6846_s3 + $0x8] sm:$0xff]  }
 0x227   : > { %v2938_v26 = vcombine.high %v2732_v32, %v2732_v32  ;;  %v2945_v7 = vrot.slane %v2732_v32, %v6021_v50  ;;  %v2733_v11 = vmax.f32 %v2672_v63, 0.0  ;;  %4716 = vmatprep.subr.bf16.mxu1 %v4817_v20 }
 0x228   : > { %v2904_v39 = vcombine.high %v2730_v54, %v2730_v54  ;;  %v2911_v47 = vrot.slane %v2730_v54, %v6021_v50  ;;  %v2731_v9 = vmax.f32 %v2664_v15, 0.0  ;;  %v3849_v54 = vsel %vm440_vm1, %v3844_v31, %v3848_v18  ;;  %4717 = vmatpush3.bf16.msra.mxu1 %v4817_v20 }
 0x229   : > { %v2952_v58 = vrot.slane %v2938_v26, %v6021_v50  ;;  %v2953_v14 = vcombine.high %v2945_v7, %v2945_v7 }
 0x22a   : > { %v2918_v27 = vrot.slane %v2904_v39, %v6021_v50  ;;  %v2919_v24 = vcombine.high %v2911_v47, %v2911_v47  ;;  %v3464_v52 = vcombine.low %v2903_v60, %v2911_v47  ;;  %v2921_v61 = vcombine.high %v2731_v9, %v2731_v9  ;;  %v4818_v60 = vld [vmem:[%s6846_s3 + $0x10] ss:$0 sps:$4 sm:$0x33]  }
 0x22b   : > { %v2954_v21 = vcombine.high %v2952_v58, %v2952_v58  ;;  %v2928_v40 = vrot.slane %v2731_v9, %v6021_v50  ;;  %v3505_v5 = vcombine.low %v2945_v7, %v2953_v14  ;;  %v2962_v39 = vrot.slane %v2733_v11, %v6021_v50  ;;  %4737 = vmatprep.subr.msk.bf16.mxu1 %vm2590_vm2, %v4818_v60 }
 0x22c   : > { %v2920_v37 = vcombine.high %v2918_v27, %v2918_v27  ;;  %v3465_v45 = vcombine.low %v2919_v24, %v2918_v27  ;;  %v3472_v8 = vrot.slane %v3464_v52, %v6021_v50  ;;  %v2935_v29 = vrot.slane %v2921_v61, %v6021_v50 }
 0x22d   : > { %v3506_v28 = vcombine.low %v2952_v58, %v2954_v21  ;;  %v2936_v33 = vcombine.high %v2928_v40, %v2928_v40  ;;  %v3513_v30 = vrot.slane %v3505_v5, %v6021_v50  ;;  %v4284_v58 = vsel %vm2590_vm2, %v4818_v60, 0 }
 0x22e   : > { %v3479_v55 = vrot.slane %v3465_v45, %v6021_v50  ;;  %v3487_v59 = vrot.slane %v2920_v37, %v6021_v50  ;;  %v2937_v12 = vcombine.high %v2935_v29, %v2935_v29  ;;  %v3528_v14 = vrot.slane %v2962_v39, %v6021_v50  ;;  %4719 = vmatpush3.bf16.msra.mxu1 %v4284_v58 }
 0x22f   : > { %v3520_v17 = vrot.slane %v3506_v28, %v6021_v50  ;;  %v3488_v41 = vcombine.low %v2928_v40, %v2936_v33  ;;  %v2955_v40 = vcombine.high %v2733_v11, %v2733_v11 }
 0x230   : > { %v3480_v36 = vcombine.low %v3472_v8, %v3479_v55  ;;  %v3489_v1 = vcombine.low %v2935_v29, %v2937_v12  ;;  %v3775_v49 = vsel %vm3245_vm11, %v3487_v59, 0.0  ;;  %v3778_v61 = vsel %vm3248_vm10, %v3528_v14, 0.0 }
 0x231   : > { %v3521_v51 = vcombine.low %v3513_v30, %v3520_v17  ;;  %v3496_v46 = vrot.slane %v3488_v41, %v6021_v50  ;;  %v3801_v43 = vpack.c.bf16 %v3775_v49, %v3775_v49  ;;  %v6361_v21 = vpack.c.bf16 %v3778_v61, %v3778_v61 }
 0x232   : > { %v3774_v56 = vsel %vm6275_vm13, %v3480_v36, 0.0  ;;  %v3503_v6 = vrot.slane %v3489_v1, %v6021_v50  ;;  %vm3213_vm13 = vmand %vm6314_vm12, %vm3198_vm14  ;;  %v2969_v5 = vrot.slane %v2955_v40, %v6021_v50  ;;  %v2970_v8 = vcombine.high %v2962_v39, %v2962_v39 }
 0x233   : > { %v6307_v0 = vpack.c.bf16 %v3774_v56, %v3773_v62  ;;  %v3777_v32 = vsel %vm6314_vm12, %v3521_v51, 0.0  ;;  %v3952_v7 = vrot.slane %v3801_v43, 1  ;;  %v3858_v52 = vshll.u32 %v3801_v43, 16 }
 0x234   : > { %v3504_v23 = vcombine.low %v3496_v46, %v3503_v6  ;;  %v3955_v53 = vrot.slane %v6361_v21, 1  ;;  %v3156_v62 = vadd.s32 5, %v6039_v2  ;;  %v3529_v57 = vcombine.low %v2970_v8, %v2969_v5 }
 0x235   : > { %3987 = vrot.lane.b32.xlu0 %v6307_v0, %s4869_s10  ;;  %4050 = vrot.lane.b32.xlu1 %v6307_v0, %s4874_s15  ;;  %v3951_v15 = vrot.slane %v6307_v0, 1  ;;  %v3853_v9 = vshll.u32 %v6307_v0, 16  ;;  %v3851_v24 = vshrl.u32 %v6307_v0, 16  ;;  %v3860_v16 = vrot.slane %v3858_v52, 1 }
 0x236   : > { %v3776_v25 = vsel %vm3213_vm13, %v3504_v23, 0.0  ;;  %v2971_v56 = vcombine.high %v2969_v5, %v2969_v5  ;;  %v3157_v46 = vadd.s32 6, %v6039_v2  ;;  %vm3173_vm2 = vcmp.ge.s32.totalorder %v3156_v62, 0 }
 0x237   : > { %v6335_v26 = vpack.c.bf16 %v3777_v32, %v3776_v25  ;;  %v3953_v47 = vsel %vm631_vm0, %v3951_v15, %v3952_v7  ;;  %v3855_v27 = vrot.slane %v3853_v9, 1  ;;  %vm3183_vm9 = vcmp.lt.s32.totalorder %v3156_v62, 16 }
 0x238   : > { %v3537_v11 = vrot.slane %v3529_v57, %v6021_v50  ;;  %vm6392_vm11 = vmand %vm3173_vm2, %vm3183_vm9  ;;  %vm3174_vm15 = vcmp.ge.s32.totalorder %v3157_v46, 0  ;;  %vm3184_vm12 = vcmp.lt.s32.totalorder %v3157_v46, 16  ;;  %v3870_v62 = vshll.u32 %v6361_v21, 16 }
 0x239   : > { %4076 = vrot.lane.b32.xlu0 %v3849_v54, %s4875_s16  ;;  %4013 = vrot.lane.b32.xlu1 %v3849_v54, %s4873_s14  ;;  %v3856_v48 = vor.u32 %v3855_v27, %v3851_v24  ;;  %v3954_v45 = vrot.slane %v6335_v26, 1  ;;  %v3865_v58 = vshll.u32 %v6335_v26, 16  ;;  %vm6403_vm13 = vmand %vm6392_vm11, %vm3198_vm14 }
 0x23a   : > { %vm6411_vm10 = vmand %vm3174_vm15, %vm3184_vm12 }
 0x23b   : > { %v3861_v37 = vsel %vm440_vm1, %v3856_v48, %v3860_v16  ;;  %v3956_v28 = vsel %vm631_vm0, %v3954_v45, %v3955_v53  ;;  %vm6422_vm2 = vmand %vm6411_vm10, %vm3198_vm14 }
 0x23c   : > { %vm3251_vm9 = vmand %vm6392_vm11, %vm3233_vm7 }
 0x23d   : > { %3914 = vrot.lane.b32.xlu1 %v3849_v54, %s4872_s13  ;;  %4098 = vrot.lane.b32.xlu0 %v3953_v47, %s4876_s17  ;;  %vm3254_vm15 = vmand %vm6411_vm10, %vm3233_vm7 }
 0x241   : > { %3972 = vrot.lane.b32.xlu1 %v3953_v47, %s4871_s12  ;;  %4035 = vrot.lane.b32.xlu0 %v3953_v47, %s4870_s11 }
 0x245   : > { %3989 = vrot.lane.b32.xlu1 %v6335_v26, %s4869_s10  ;;  %4052 = vrot.lane.b32.xlu0 %v6335_v26, %s4874_s15 }
 0x249   : > { %4015 = vrot.lane.b32.xlu0 %v3861_v37, %s4873_s14  ;;  %4078 = vrot.lane.b32.xlu1 %v3861_v37, %s4875_s16 }
 0x24d   : > { %4100 = vrot.lane.b32.xlu0 %v3956_v28, %s4876_s17  ;;  %3916 = vrot.lane.b32.xlu1 %v3861_v37, %s4872_s13 }
 0x251   : > { %3974 = vrot.lane.b32.xlu0 %v3956_v28, %s4871_s12  ;;  %4037 = vrot.lane.b32.xlu1 %v3956_v28, %s4870_s11 }
 0x262   : > { %v4704_v10 = vpop.f32.mrb[12].mxu0 }
 0x263   : > { %v2685_v55 = vadd.f32 %v4704_v10, %v6013_v13  ;;  %v2676_v29 = vpop.f32.mrb[13].mxu0 }
 0x264   : > { %v2677_v59 = vadd.f32 %v6013_v13, %v2676_v29  ;;  %v4705_v33 = vpop.f32.mrb[14].mxu0 }
 0x265   : > { %v2736_v17 = vmax.f32 %v2685_v55, 0.0  ;;  %v2688_v36 = vadd.f32 %v4705_v33, %v6013_v13  ;;  %v2679_v12 = vpop.f32.mrb[15].mxu0  ;;  %v3867_v55 = vrot.slane %v3865_v58, 1 }
 0x266   : > { %v2734_v44 = vmax.f32 %v2677_v59, 0.0  ;;  %v2680_v41 = vadd.f32 %v6013_v13, %v2679_v12 }
 0x267   : > { %v3006_v30 = vcombine.high %v2736_v17, %v2736_v17  ;;  %v2737_v1 = vmax.f32 %v2688_v36, 0.0  ;;  %v3013_v4 = vrot.slane %v2736_v17, %v6021_v50 }
 0x268   : > { %v2972_v63 = vcombine.high %v2734_v44, %v2734_v44  ;;  %v2979_v49 = vrot.slane %v2734_v44, %v6021_v50  ;;  %v2735_v35 = vmax.f32 %v2680_v41, 0.0  ;;  %v3863_v44 = vshrl.u32 %v6335_v26, 16 }
 0x269   : > { %v3020_v51 = vrot.slane %v3006_v30, %v6021_v50  ;;  %v3030_v34 = vrot.slane %v2737_v1, %v6021_v50  ;;  %v3021_v32 = vcombine.high %v3013_v4, %v3013_v4  ;;  %v3023_v24 = vcombine.high %v2737_v1, %v2737_v1 }
 0x26a   : > { %v2986_v6 = vrot.slane %v2972_v63, %v6021_v50  ;;  %v2987_v31 = vcombine.high %v2979_v49, %v2979_v49  ;;  %v3530_v23 = vcombine.low %v2971_v56, %v2979_v49  ;;  %v2989_v18 = vcombine.high %v2735_v35, %v2735_v35  ;;  %v6447_v63 = vpop.permute.xlu0 %3983 }
 0x26b   : > { %v3022_v43 = vcombine.high %v3020_v51, %v3020_v51  ;;  %v3038_v20 = vcombine.high %v3030_v34, %v3030_v34  ;;  %v2996_v39 = vrot.slane %v2735_v35, %v6021_v50  ;;  %v3571_v48 = vcombine.low %v3013_v4, %v3021_v32 }
 0x26c   : > { %v3544_v25 = vrot.slane %v3530_v23, %v6021_v50  ;;  %v2988_v54 = vcombine.high %v2986_v6, %v2986_v6  ;;  %v3546_v7 = vcombine.low %v2987_v31, %v2986_v6  ;;  %v3003_v9 = vrot.slane %v2989_v18, %v6021_v50 }
 0x26d   : > { %v3587_v15 = vcombine.low %v3020_v51, %v3022_v43  ;;  %v3588_v60 = vcombine.low %v3030_v34, %v3038_v20  ;;  %v3004_v40 = vcombine.high %v2996_v39, %v2996_v39  ;;  %v6408_v5 = vrot.slane %v3023_v24, %v6021_v50 }
 0x26e   : > { %v3545_v47 = vcombine.low %v3537_v11, %v3544_v25  ;;  %v3547_v61 = vcombine.low %v2988_v54, %v2996_v39  ;;  %v3005_v16 = vcombine.high %v3003_v9, %v3003_v9  ;;  %v3554_v37 = vrot.slane %v3546_v7, %v6021_v50  ;;  %v6466_v43 = vpop.permute.xlu0 %3966 }
 0x26f   : > { %v3595_v14 = vrot.slane %v3587_v15, %v6021_v50  ;;  %v3602_v52 = vrot.slane %v3588_v60, %v6021_v50  ;;  %v3585_v29 = vrot.slane %v3571_v48, %v6021_v50  ;;  %v3569_v41 = vrot.slane %v3004_v40, %v6021_v50 }
 0x270   : > { %v3561_v53 = vrot.slane %v3547_v61, %v6021_v50  ;;  %v3570_v10 = vcombine.low %v3003_v9, %v3005_v16  ;;  %v3779_v17 = vsel %vm6403_vm13, %v3545_v47, 0.0  ;;  %v3610_v56 = vrot.slane %v6408_v5, %v6021_v50 }
 0x271   : > { %v3603_v45 = vcombine.low %v3595_v14, %v3602_v52  ;;  %v3868_v1 = vor.u32 %v3867_v55, %v3863_v44  ;;  %v3872_v35 = vrot.slane %v3870_v62, 1  ;;  %v3781_v51 = vsel %vm3251_vm9, %v3569_v41, 0.0 }
 0x272   : > { %v3562_v8 = vcombine.low %v3554_v37, %v3561_v53  ;;  %v3578_v33 = vrot.slane %v3570_v10, %v6021_v50  ;;  %v3784_v34 = vsel %vm3254_vm15, %v3610_v56, 0.0  ;;  %v6458_v6 = vpack.c.bf16 %v3781_v51, %v3781_v51  ;;  %v6490_v37 = vpop.permute.xlu0 %4031 }
 0x273   : > { %v3783_v21 = vsel %vm6411_vm10, %v3603_v45, 0.0  ;;  %v3873_v46 = vsel %vm440_vm1, %v3868_v1, %v3872_v35  ;;  %v6461_v31 = vadd.s32 8, %v6039_v2  ;;  %v6464_v18 = vpack.c.bf16 %v3784_v34, %v3784_v34 }
 0x274   : > { %v3780_v12 = vsel %vm6392_vm11, %v3562_v8, 0.0  ;;  %v3586_v57 = vcombine.low %v3578_v33, %v3585_v29  ;;  %v6469_v20 = vadd.s32 7, %v6039_v2  ;;  %v3039_v7 = vcombine.high %v6408_v5, %v6408_v5 }
 0x275   : > { %v6431_v30 = vpack.c.bf16 %v3780_v12, %v3779_v17  ;;  %vm3176_vm11 = vcmp.ge.s32.totalorder %v6461_v31, 0  ;;  %vm3186_vm12 = vcmp.lt.s32.totalorder %v6461_v31, 16  ;;  %v3958_v39 = vrot.slane %v6458_v6, 1 }
 0x276   : > { %v3782_v4 = vsel %vm6422_vm2, %v3586_v57, 0.0  ;;  %vm3175_vm13 = vcmp.ge.s32.totalorder %v6469_v20, 0  ;;  %vm3185_vm10 = vcmp.lt.s32.totalorder %v6469_v20, 16  ;;  %v3961_v27 = vrot.slane %v6464_v18, 1  ;;  %v3911_v51 = vpop.permute.xlu0 %3910  ;;  %vm6513_vm2 = vmand %vm3176_vm11, %vm3186_vm12 }
 0x277   : > { %3991 = vrot.lane.b32.xlu0 %v6431_v30, %s4869_s10  ;;  %4054 = vrot.lane.b32.xlu1 %v6431_v30, %s4874_s15  ;;  %v6453_v49 = vpack.c.bf16 %v3783_v21, %v3782_v4  ;;  %v3877_v23 = vshll.u32 %v6431_v30, 16  ;;  %v3957_v32 = vrot.slane %v6431_v30, 1  ;;  %v3882_v24 = vshll.u32 %v6458_v6, 16  ;;  %vm6524_vm9 = vmand %vm3175_vm13, %vm3185_vm10 }
 0x278   : > { %v3875_v16 = vshrl.u32 %v6431_v30, 16  ;;  %vm6539_vm15 = vmand %vm6513_vm2, %vm3198_vm14  ;;  %vm6888_vm13 = vcmask 162816  }
 0x279   : > { %v3879_v47 = vrot.slane %v3877_v23, 1  ;;  %v3959_v48 = vsel %vm631_vm0, %v3957_v32, %v3958_v39  ;;  %v3960_v40 = vrot.slane %v6453_v49, 1  ;;  %vm3222_vm11 = vmand %vm6524_vm9, %vm3198_vm14 }
 0x27a   : > { %vm3257_vm12 = vmand %vm6524_vm9, %vm3233_vm7 }
 0x27b   : > { %4080 = vrot.lane.b32.xlu0 %v3873_v46, %s4875_s16  ;;  %4017 = vrot.lane.b32.xlu1 %v3873_v46, %s4873_s14  ;;  %v3880_v8 = vor.u32 %v3879_v47, %v3875_v16  ;;  %v3962_v35 = vsel %vm631_vm0, %v3960_v40, %v3961_v27  ;;  %v6533_v16 = vpop.permute.xlu1 %3968 }
 0x27f   : > { %4056 = vrot.lane.b32.xlu0 %v6453_v49, %s4874_s15  ;;  %3918 = vrot.lane.b32.xlu1 %v3873_v46, %s4872_s13 }
 0x280   : > { %v4708_v11 = vpop.f32.mrb[16].mxu0 }
 0x281   : > { %v2701_v25 = vadd.f32 %v4708_v11, %v6013_v13  ;;  %v2692_v54 = vpop.f32.mrb[17].mxu0 }
 0x282   : > { %v2693_v15 = vadd.f32 %v6013_v13, %v2692_v54  ;;  %v4709_v60 = vpop.f32.mrb[18].mxu0 }
 0x283   : > { %v2740_v9 = vmax.f32 %v2701_v25, 0.0  ;;  %v2704_v58 = vadd.f32 %v4709_v60, %v6013_v13  ;;  %v2695_v14 = vpop.f32.mrb[19].mxu0  ;;  %3993 = vrot.lane.b32.xlu1 %v6453_v49, %s4869_s10  ;;  %4102 = vrot.lane.b32.xlu0 %v3959_v48, %s4876_s17 }
 0x284   : > { %v2738_v52 = vmax.f32 %v2693_v15, 0.0  ;;  %v2696_v61 = vadd.f32 %v6013_v13, %v2695_v14  ;;  %v3884_v14 = vrot.slane %v3882_v24, 1 }
 0x285   : > { %v3074_v45 = vcombine.high %v2740_v9, %v2740_v9  ;;  %v3081_v53 = vrot.slane %v2740_v9, %v6021_v50  ;;  %v2741_v28 = vmax.f32 %v2704_v58, 0.0 }
 0x286   : > { %v3040_v10 = vcombine.high %v2738_v52, %v2738_v52  ;;  %v3047_v13 = vrot.slane %v2738_v52, %v6021_v50  ;;  %v2739_v5 = vmax.f32 %v2696_v61, 0.0 }
 0x287   : > { %v3088_v55 = vrot.slane %v3074_v45, %v6021_v50  ;;  %v3089_v29 = vcombine.high %v3081_v53, %v3081_v53  ;;  %v3091_v59 = vcombine.high %v2741_v28, %v2741_v28  ;;  %v3098_v33 = vrot.slane %v2741_v28, %v6021_v50  ;;  %3976 = vrot.lane.b32.xlu1 %v3959_v48, %s4871_s12  ;;  %v6545_v28 = vpop.permute.xlu0 %4048 }
 0x288   : > { %v3054_v17 = vrot.slane %v3040_v10, %v6021_v50  ;;  %v3055_v36 = vcombine.high %v3047_v13, %v3047_v13  ;;  %v3611_v12 = vcombine.low %v3039_v7, %v3047_v13  ;;  %v3057_v44 = vcombine.high %v2739_v5, %v2739_v5  ;;  %4039 = vrot.lane.b32.xlu0 %v3959_v48, %s4870_s11 }
 0x289   : > { %v3090_v62 = vcombine.high %v3088_v55, %v3088_v55  ;;  %v3652_v41 = vcombine.low %v3081_v53, %v3089_v29  ;;  %v3105_v57 = vrot.slane %v3091_v59, %v6021_v50  ;;  %v3106_v56 = vcombine.high %v3098_v33, %v3098_v33 }
 0x28a   : > { %v3612_v1 = vcombine.low %v3055_v36, %v3054_v17  ;;  %v3056_v21 = vcombine.high %v3054_v17, %v3054_v17  ;;  %v3064_v4 = vrot.slane %v2739_v5, %v6021_v50  ;;  %v3619_v46 = vrot.slane %v3611_v12, %v6021_v50  ;;  %v6569_v36 = vpop.permute.xlu1 %3985 }
 0x28b   : > { %v3653_v34 = vcombine.low %v3088_v55, %v3090_v62  ;;  %v3107_v6 = vcombine.high %v3105_v57, %v3105_v57  ;;  %v3669_v23 = vcombine.low %v3098_v33, %v3106_v56  ;;  %v3071_v32 = vrot.slane %v3057_v44, %v6021_v50  ;;  %4041 = vrot.lane.b32.xlu1 %v3962_v35, %s4870_s11  ;;  %v4012_v62 = vpop.permute.xlu0 %4011 }
 0x28c   : > { %v3626_v11 = vrot.slane %v3612_v1, %v6021_v50  ;;  %v3072_v25 = vcombine.high %v3064_v4, %v3064_v4  ;;  %v3628_v54 = vcombine.low %v3056_v21, %v3064_v4  ;;  %v3660_v7 = vrot.slane %v3652_v41, %v6021_v50  ;;  %4104 = vrot.lane.b32.xlu0 %v3962_v35, %s4876_s17 }
 0x28d   : > { %v3667_v60 = vrot.slane %v3653_v34, %v6021_v50  ;;  %v3670_v39 = vcombine.low %v3105_v57, %v3107_v6  ;;  %v3677_v52 = vrot.slane %v3669_v23, %v6021_v50  ;;  %v3889_v48 = vshll.u32 %v6453_v49, 16 }
 0x28e   : > { %v3627_v31 = vcombine.low %v3619_v46, %v3626_v11  ;;  %v3629_v9 = vcombine.low %v3072_v25, %v3071_v32  ;;  %v3636_v58 = vrot.slane %v3628_v54, %v6021_v50  ;;  %v3073_v45 = vcombine.high %v3071_v32, %v3071_v32  ;;  %v3913_v21 = vpop.permute.xlu1 %3912 }
 0x28f   : > { %v3668_v27 = vcombine.low %v3660_v7, %v3667_v60  ;;  %v3684_v61 = vrot.slane %v3670_v39, %v6021_v50  ;;  %v3885_v53 = vsel %vm440_vm1, %v3880_v8, %v3884_v14  ;;  %v3891_v8 = vrot.slane %v3889_v48, 1  ;;  %v6581_v34 = vpop.permute.xlu0 %4096  ;;  %v4828_v39 = vld [vmem:[%s6845_s2] ss:$0 sm:$0xff] }
 0x290   : > { %v3643_v24 = vrot.slane %v3629_v9, %v6021_v50  ;;  %4082 = vrot.lane.b32.xlu1 %v3885_v53, %s4875_s16  ;;  %3978 = vrot.lane.b32.xlu0 %v3962_v35, %s4871_s12  ;;  %v3785_v55 = vsel %vm3222_vm11, %v3627_v31, 0.0  ;;  %v3651_v29 = vrot.slane %v3073_v45, %v6021_v50  ;;  %v3887_v12 = vshrl.u32 %v6453_v49, 16 }
 0x291   : > { %v3685_v40 = vcombine.low %v3677_v52, %v3684_v61  ;;  %v3788_v13 = vsel %vm6539_vm15, %v3668_v27, 0.0  ;;  %v3894_v44 = vshll.u32 %v6464_v18, 16  ;;  %v4113_v35 = vsel %vm994_vm3, %v6115_v22, %v3911_v51  ;;  %vm6623_vm15 = vmand %vm6513_vm2, %vm3233_vm7 }
 0x292   : > { %v3644_v10 = vcombine.low %v3636_v58, %v3643_v24  ;;  %v3892_v41 = vor.u32 %v3891_v8, %v3887_v12  ;;  %v3787_v57 = vsel %vm3257_vm12, %v3651_v29, 0.0  ;;  %v4129_v23 = vsel %vm1035_vm4, %v4113_v35, %v6466_v43  ;;  %v6591_v22 = vpop.permute.xlu1 %4033 }
 0x293   : > { %v3789_v5 = vsel %vm6513_vm2, %v3685_v40, 0.0  ;;  %v3896_v56 = vrot.slane %v3894_v44, 1  ;;  %v3809_v1 = vpack.c.bf16 %v3787_v57, %v3787_v57  ;;  %v4145_v51 = vsel %vm1076_vm5, %v4129_v23, %v6447_v63  ;;  %v6596_v25 = vpop.permute.xlu0 %3970 }
 0x294   : > { %v3786_v59 = vsel %vm6524_vm9, %v3644_v10, 0.0  ;;  %v6560_v33 = vpack.c.bf16 %v3789_v5, %v3788_v13  ;;  %3920 = vrot.lane.b32.xlu1 %v3885_v53, %s4872_s13  ;;  %4019 = vrot.lane.b32.xlu0 %v3885_v53, %s4873_s14  ;;  %v4161_v43 = vsel %vm1117_vm6, %v4145_v51, %v4012_v62  ;;  %v3160_v31 = vadd.s32 9, %v6039_v2 }
 0x295   : > { %v6562_v17 = vpack.c.bf16 %v3786_v59, %v3785_v55  ;;  %v3897_v4 = vsel %vm440_vm1, %v3892_v41, %v3896_v56  ;;  %v3964_v6 = vrot.slane %v3809_v1, 1  ;;  %v3906_v60 = vshll.u32 %v3809_v1, 16 }
 0x296   : > { %v4177_v61 = vsel %vm6888_vm13, %v4161_v43, %v6490_v37  ;;  %v4115_v53 = vsel %vm994_vm3, %v6201_v19, %v3913_v21  ;;  %vm3177_vm10 = vcmp.ge.s32.totalorder %v3160_v31, 0  ;;  %vm3187_vm9 = vcmp.lt.s32.totalorder %v3160_v31, 16 }
 0x297   : > { %v3963_v18 = vrot.slane %v6562_v17, 1  ;;  %v3901_v46 = vshll.u32 %v6562_v17, 16  ;;  %v3899_v7 = vshrl.u32 %v6562_v17, 16  ;;  %v3908_v24 = vrot.slane %v3906_v60, 1  ;;  %vm6638_vm2 = vmand %vm3177_vm10, %vm3187_vm9 }
 0x298   : > { %4058 = vrot.lane.b32.xlu1 %v6562_v17, %s4874_s15  ;;  %3995 = vrot.lane.b32.xlu0 %v6562_v17, %s4869_s10  ;;  %v4193_v55 = vsel %vm1199_vm8, %v4177_v61, %v6545_v28  ;;  %v4002_v29 = vshll.u32 %v6560_v33, 16  ;;  %v4131_v57 = vsel %vm1035_vm4, %v4115_v53, %v6533_v16  ;;  %vm6893_vm11 = vcmask 228352   ;;  %vm3263_vm12 = vmand %vm6638_vm2, %vm3233_vm7 }
 0x299   : > { %v3965_v11 = vsel %vm631_vm0, %v3963_v18, %v3964_v6  ;;  %v3903_v32 = vrot.slane %v3901_v46, 1  ;;  %v4028_v21 = vrot.slane %v6560_v33, 1  ;;  %v4000_v60 = vshrl.u32 %v6560_v33, 16  ;;  %vm3228_vm7 = vmand %vm6638_vm2, %vm3198_vm14 }
 0x29a   : > { %vm6894_vm13 = vcmask 261120   ;;  %vm6895_vm10 = vcmask 293888   ;;  %vm6896_vm9 = vcmask 162816   ;;  %vm6897_vm14 = vmmov %vm6893_vm11 }
 0x29b   : > { %v3904_v14 = vor.u32 %v3903_v32, %v3899_v7 }
 0x29c   : > { %4021 = vrot.lane.b32.xlu1 %v3897_v4, %s4873_s14  ;;  %4084 = vrot.lane.b32.xlu0 %v3897_v4, %s4875_s16 }
 0x29d   : > { %v6617_v37 = vsel %vm440_vm1, %v3904_v14, %v3908_v24  ;;  %v4147_v24 = vsel %vm1076_vm5, %v4131_v57, %v6569_v36 }
 0x2a0   : > { %3922 = vrot.lane.b32.xlu1 %v3897_v4, %s4872_s13  ;;  %4106 = vrot.lane.b32.xlu0 %v3965_v11, %s4876_s17 }
 0x2a3   : > { %v4712_v54 = vpop.f32.mrb[20].mxu0 }
 0x2a4   : > { %v2717_v47 = vadd.f32 %v4828_v39, %v4712_v54  ;;  %v2708_v9 = vpop.f32.mrb[21].mxu0  ;;  %3997 = vrot.lane.b32.xlu1 %v6560_v33, %s4869_s10  ;;  %4043 = vrot.lane.b32.xlu0 %v3965_v11, %s4870_s11  ;;  %s4617_s10 = sshll.u32 %s6934_s29, 6 }
 0x2a5   : > { %v2709_v63 = vadd.f32 %v4828_v39, %v2708_v9  ;;  %v4713_v58 = vpop.f32.mrb[22].mxu0 }
 0x2a6   : > { %v2744_v27 = vmax.f32 %v2717_v47, 0.0  ;;  %v2711_v52 = vpop.f32.mrb[23].mxu0 }
 0x2a7   : > { %v2742_v48 = vmax.f32 %v2709_v63, 0.0  ;;  %v2712_v20 = vadd.f32 %v4828_v39, %v2711_v52  ;;  %v6609_v45 = vpop.permute.xlu1 %4050  ;;  %v3988_v2 = vpop.permute.xlu0 %3987 }
 0x2a8   : > { %v3148_v40 = vrot.slane %v2744_v27, %v6021_v50  ;;  %3980 = vrot.lane.b32.xlu1 %v3965_v11, %s4871_s12  ;;  %4023 = vrot.lane.b32.xlu0 %v6617_v37, %s4873_s14  ;;  %v4004_v11 = vrot.slane %v4002_v29, 1 }
 0x2a9   : > { %v3108_v10 = vcombine.high %v2742_v48, %v2742_v48  ;;  %v3115_v13 = vrot.slane %v2742_v48, %v6021_v50  ;;  %v2743_v5 = vmax.f32 %v2712_v20, 0.0 }
 0x2aa   : > { %v3149_v8 = vcombine.high %v3148_v40, %v3148_v40  ;;  %v4005_v27 = vor.u32 %v4004_v11, %v4000_v60 }
 0x2ab   : > { %v3122_v59 = vrot.slane %v3108_v10, %v6021_v50  ;;  %v3123_v12 = vcombine.high %v3115_v13, %v3115_v13  ;;  %v3692_v44 = vrot.slane %v3115_v13, %v6021_v50  ;;  %v3125_v62 = vcombine.high %v2743_v5, %v2743_v5  ;;  %v4014_v41 = vpop.permute.xlu1 %4013  ;;  %v4077_v15 = vpop.permute.xlu0 %4076 }
 0x2ac   : > { %v3132_v28 = vrot.slane %v2743_v5, %v6021_v50  ;;  %v4209_v1 = vsel %vm6893_vm11, %v4193_v55, %v4077_v15  ;;  %v3733_v16 = vrot.slane %v3149_v8, %v6021_v50  ;;  %4060 = vrot.lane.b32.xlu0 %v6560_v33, %s4874_s15 }
 0x2ad   : > { %v3693_v4 = vcombine.low %v3123_v12, %v3122_v59  ;;  %v3790_v35 = vsel %vm6623_vm15, %v3692_v44, 0.0  ;;  %v3124_v18 = vcombine.high %v3122_v59, %v3122_v59  ;;  %v3139_v46 = vrot.slane %v3125_v62, %v6021_v50  ;;  %vm6898_vm15 = vmmov %vm6894_vm13 }
 0x2ae   : > { %v3811_v6 = vpack.c.bf16 %v3790_v35, %v3790_v35  ;;  %v3140_v23 = vcombine.high %v3132_v28, %v3132_v28  ;;  %v4225_v39 = vsel %vm6894_vm13, %v4209_v1, %v6581_v34  ;;  %v3793_v14 = vsel %vm3263_vm12, %v3733_v16, 0.0 }
 0x2af   : > { %v3701_v32 = vrot.slane %v3693_v4, %v6021_v50  ;;  %v3141_v51 = vcombine.high %v3139_v46, %v3139_v46  ;;  %v3694_v54 = vcombine.low %v3124_v18, %v3132_v28  ;;  %v3915_v7 = vpop.permute.xlu1 %3914  ;;  %4720 = vmatprep.mubr.msk.bf16.mxu1 %vm6895_vm10, %v4225_v39  ;;  %v4099_v12 = vpop.permute.xlu0 %4098 }
 0x2b0   : > { %v3710_v43 = vcombine.low %v3140_v23, %v3139_v46  ;;  %v4117_v47 = vsel %vm994_vm3, %v6245_v42, %v3915_v7  ;;  %v4029_v31 = vrot.slane %v3811_v6, 1  ;;  %v4007_v58 = vshll.u32 %v3811_v6, 16 }
 0x2b1   : > { %v3708_v3 = vrot.slane %v3694_v54, %v6021_v50  ;;  %v3711_v9 = vcombine.low %v3141_v51, %v3148_v40  ;;  %v4133_v63 = vsel %vm1035_vm4, %v4117_v47, %v6596_v25  ;;  %v4163_v25 = vsel %vm1117_vm6, %v4147_v24, %v4014_v41 }
 0x2b2   : > { %v4030_v33 = vsel %vm631_vm0, %v4028_v21, %v4029_v31  ;;  %v4149_v52 = vsel %vm1076_vm5, %v4133_v63, %v3988_v2  ;;  %v3718_v61 = vrot.slane %v3710_v43, %v6021_v50  ;;  %v4009_v20 = vrot.slane %v4007_v58, 1 }
 0x2b3   : > { %v3709_v34 = vcombine.low %v3701_v32, %v3708_v3  ;;  %v3725_v42 = vrot.slane %v3711_v9, %v6021_v50  ;;  %v3973_v48 = vpop.permute.xlu1 %3972  ;;  %4045 = vrot.lane.b32.xlu1 %v4030_v33, %s4870_s11  ;;  %v3813_v40 = vpack.c.bf16 %v3793_v14, %v3793_v14  ;;  %v4179_v38 = vsel %vm6896_vm9, %v4163_v25, %v6591_v22  ;;  %v4036_v4 = vpop.permute.xlu0 %4035 }
 0x2b4   : > { %v4010_v2 = vsel %vm440_vm1, %v4005_v27, %v4009_v20  ;;  %v4195_v29 = vsel %vm1199_vm8, %v4179_v38, %v6609_v45 }
 0x2b5   : > { %v3726_v53 = vcombine.low %v3718_v61, %v3725_v42  ;;  %4088 = vrot.lane.b32.xlu0 %v4010_v2, %s4875_s16  ;;  %v3791_v10 = vsel %vm3228_vm7, %v3709_v34, 0.0  ;;  %v4072_v8 = vshll.u32 %v3813_v40, 16  ;;  %v4094_v55 = vrot.slane %v3813_v40, 1 }
 0x2b7   : > { %v3990_v50 = vpop.permute.xlu1 %3989  ;;  %4086 = vrot.lane.b32.xlu1 %v6617_v37, %s4875_s16  ;;  %v3792_v36 = vsel %vm6638_vm2, %v3726_v53, 0.0  ;;  %vm6899_vm2 = vmmov %vm6895_vm10  ;;  %v4074_v56 = vrot.slane %v4072_v8, 1  ;;  %v4053_v35 = vpop.permute.xlu0 %4052 }
 0x2b8   : > { %v3812_v13 = vpack.c.bf16 %v3792_v36, %v3791_v10  ;;  %vm6903_vm12 = vmmov %vm6899_vm2 }
 0x2b9   : > { %4108 = vrot.lane.b32.xlu0 %v4030_v33, %s4876_s17 }
 0x2ba   : > { %v4067_v5 = vshll.u32 %v3812_v13, 16  ;;  %v4093_v19 = vrot.slane %v3812_v13, 1  ;;  %v4065_v62 = vshrl.u32 %v3812_v13, 16 }
 0x2bb   : > { %v4079_v59 = vpop.permute.xlu1 %4078  ;;  %3924 = vrot.lane.b32.xlu1 %v6617_v37, %s4872_s13  ;;  %v4016_v18 = vpop.permute.xlu0 %4015  ;;  %s6759_s13 = scalar_lea.vmem %s6848_s5, %s4617_s10 }
 0x2bc   : > { %v4211_v44 = vsel %vm6897_vm14, %v4195_v29, %v4079_v59  ;;  %v4069_v41 = vrot.slane %v4067_v5, 1  ;;  %v4095_v22 = vsel %vm631_vm0, %v4093_v19, %v4094_v55  ;;  %vm6900_vm0 = vmmov %vm6896_vm9 }
 0x2bd   : > { %v4227_v15 = vsel %vm6898_vm15, %v4211_v44, %v4099_v12  ;;  %vm6907_vm9 = vmmov %vm6899_vm2 }
 0x2be   : > { %4721 = vmatmul.mubr.msk.bf16.vlgmr.msra.gmra.mrb[0].mxu1 %vm6899_vm2, %v4227_v15  ;;  %v4070_v57 = vor.u32 %v4069_v41, %v4065_v62  ;;  %vm6908_vm14 = vmmov %vm6900_vm0 }
 0x2bf   : > { %v3917_v28 = vpop.permute.xlu1 %3916  ;;  %4025 = vrot.lane.b32.xlu1 %v4010_v2, %s4873_s14  ;;  %v4101_v46 = vpop.permute.xlu0 %4100 }
 0x2c0   : > { %v4119_v45 = vsel %vm994_vm3, %v6307_v0, %v3917_v28  ;;  %v4075_v37 = vsel %vm440_vm1, %v4070_v57, %v4074_v56  ;;  %v4165_v0 = vsel %vm1117_vm6, %v4149_v52, %v4016_v18  ;;  %vm6901_vm1 = vmmov %vm6893_vm11 }
 0x2c1   : > { %v4135_v1 = vsel %vm1035_vm4, %v4119_v45, %v3973_v48  ;;  %v4181_v32 = vsel %vm6900_vm0, %v4165_v0, %v4036_v4  ;;  %vm6902_vm11 = vmmov %vm6894_vm13 }
 0x2c2   : > { %v4151_v21 = vsel %vm1076_vm5, %v4135_v1, %v3990_v50  ;;  %v4197_v54 = vsel %vm1199_vm8, %v4181_v32, %v4053_v35  ;;  %vm6904_vm13 = vmmov %vm6900_vm0 }
 0x2c3   : > { %4062 = vrot.lane.b32.xlu1 %v3812_v13, %s4874_s15  ;;  %v4038_v16 = vpop.permute.xlu1 %4037  ;;  %v3975_v6 = vpop.permute.xlu0 %3974  ;;  %vm6905_vm10 = vmmov %vm6901_vm1 }
 0x2c4   : > { %vm6906_vm7 = vmmov %vm6902_vm11 }
 0x2c5   : > { %vm6909_vm15 = vmmov %vm6901_vm1 }
 0x2c6   : > { %vm6910_vm2 = vmmov %vm6906_vm7 }
 0x2c7   : > { %4090 = vrot.lane.b32.xlu1 %v4075_v37, %s4875_s16  ;;  %vm6911_vm0 = vmmov %vm6907_vm9  ;;  %s4618_s16 = sshll.u32 %s6934_s29, 7 }
 0x2c8   : > { %s6773_s19 = scalar_lea.vmem %s6849_s6, %s4618_s16 }
 0x2cb   : > { %4110 = vrot.lane.b32.xlu1 %v4095_v22, %s4876_s17 }
 0x2e9   : > { %v4055_v23 = vpop.permute.xlu1 %4054  ;;  %v3992_v11 = vpop.permute.xlu0 %3991 }
 0x2ed   : > { %v4018_v51 = vpop.permute.xlu1 %4017  ;;  %v4081_v7 = vpop.permute.xlu0 %4080 }
 0x2ee   : > { %v4213_v60 = vsel %vm6901_vm1, %v4197_v54, %v4081_v7  ;;  %v4167_v58 = vsel %vm1117_vm6, %v4151_v21, %v4018_v51  ;;  %vm6912_vm1 = vmmov %vm6904_vm13 }
 0x2ef   : > { %v4229_v43 = vsel %vm6902_vm11, %v4213_v60, %v4101_v46  ;;  %v4183_v33 = vsel %vm6904_vm13, %v4167_v58, %v4038_v16  ;;  %vm6913_vm11 = vmmov %vm6912_vm1  ;;  %v4620_v58 = vld [vmem:[%s6759_s13] sm:$0xff]  }
 0x2f0   : > { %4724 = vmatprep.mubr.msk.bf16.mxu1 %vm6903_vm12, %v4229_v43  ;;  %v4199_v34 = vsel %vm1199_vm8, %v4183_v33, %v4055_v23  ;;  %vm6914_vm12 = vmmov %vm6905_vm10 }
 0x2f1   : > { %v3919_v39 = vpop.permute.xlu1 %3918  ;;  %v4057_v47 = vpop.permute.xlu0 %4056  ;;  %vm6915_vm13 = vmmov %vm6910_vm2 }
 0x2f2   : > { %v4121_v52 = vsel %vm994_vm3, %v6335_v26, %v3919_v39 }
 0x2f3   : > { %v4137_v24 = vsel %vm1035_vm4, %v4121_v52, %v3975_v6  ;;  %v4621_v52 = vunpack.c.l.bf16 %v4620_v58 }
 0x2f4   : > { %v4153_v53 = vsel %vm1076_vm5, %v4137_v24, %v3992_v11  ;;  %v4622_v24 = vunpack.c.h.bf16 %v4620_v58 }
 0x2f5   : > { %v3994_v31 = vpop.permute.xlu1 %3993  ;;  %v4103_v3 = vpop.permute.xlu0 %4102 }
 0x2f9   : > { %v3977_v9 = vpop.permute.xlu1 %3976 }
 0x2fa   : > { %v4040_v63 = vpop.permute.xlu0 %4039 }
 0x2fd   : > { %v4042_v14 = vpop.permute.xlu1 %4041 }
 0x2fe   : > { %v4105_v27 = vpop.permute.xlu0 %4104 }
 0x302   : > { %v4083_v61 = vpop.permute.xlu1 %4082  ;;  %v3979_v48 = vpop.permute.xlu0 %3978 }
 0x303   : > { %v4215_v42 = vsel %vm6905_vm10, %v4199_v34, %v4083_v61 }
 0x304   : > { %v4231_v20 = vsel %vm6906_vm7, %v4215_v42, %v4103_v3  ;;  %vm6916_vm7 = vmmov %vm6911_vm0 }
 0x305   : > { %4725 = vmatmul.mubr.msk.bf16.gmra.mrb[4].mxu1 %vm6907_vm9, %v4231_v20  ;;  %vm6917_vm9 = vmmov %vm6910_vm2 }
 0x306   : > { %v3921_v25 = vpop.permute.xlu1 %3920  ;;  %v4020_v2 = vpop.permute.xlu0 %4019 }
 0x307   : > { %v4169_v40 = vsel %vm1117_vm6, %v4153_v53, %v4020_v2  ;;  %v4123_v12 = vsel %vm994_vm3, %v6431_v30, %v3921_v25 }
 0x308   : > { %v4185_v10 = vsel %vm6908_vm14, %v4169_v40, %v4040_v63  ;;  %v4139_v62 = vsel %vm1035_vm4, %v4123_v12, %v3977_v9  ;;  %vm6918_vm14 = vmmov %vm6911_vm0 }
 0x309   : > { %v4201_v38 = vsel %vm1199_vm8, %v4185_v10, %v4057_v47  ;;  %v4155_v15 = vsel %vm1076_vm5, %v4139_v62, %v3994_v31 }
 0x30a   : > { %v4059_v50 = vpop.permute.xlu1 %4058  ;;  %v3996_v26 = vpop.permute.xlu0 %3995 }
 0x30e   : > { %v4022_v36 = vpop.permute.xlu1 %4021  ;;  %v4085_v13 = vpop.permute.xlu0 %4084 }
 0x30f   : > { %v4217_v5 = vsel %vm6909_vm15, %v4201_v38, %v4085_v13  ;;  %v4171_v57 = vsel %vm1117_vm6, %v4155_v15, %v4022_v36  ;;  %vm6919_vm15 = vmmov %vm6912_vm1  ;;  %v4653_v36 = vld [vmem:[%s6759_s13 + $0x18] sm:$0xff]   ;;  %v4652_v38 = vld [vmem:[%s6759_s13 + $0x10] sm:$0xff]  }
 0x310   : > { %v4233_v8 = vsel %vm6910_vm2, %v4217_v5, %v4105_v27  ;;  %v4187_v37 = vsel %vm6912_vm1, %v4171_v57, %v4042_v14  ;;  %vm6920_vm2 = vmmov %vm6905_vm10  ;;  %v6766_v14 = vld [vmem:[%s6847_s4] ss:$0 sm:$0xff]  ;;  %v4633_v13 = vunpack.c.l.bf16 %v4653_v36 }
 0x311   : > { %4728 = vmatprep.mubr.msk.bf16.mxu1 %vm6911_vm0, %v4233_v8  ;;  %v4203_v4 = vsel %vm1199_vm8, %v4187_v37, %v4059_v50  ;;  %vm6921_vm0 = vmmov %vm6917_vm9  ;;  %v4629_v8 = vunpack.c.l.bf16 %v4652_v38  ;;  %v4654_v37 = vld [vmem:[%s6759_s13 + $0x20] sm:$0xff]  }
 0x312   : > { %v4107_v19 = vpop.permute.xlu0 %4106  ;;  %v3923_v55 = vpop.permute.xlu1 %3922  ;;  %vm6922_vm1 = vmmov %vm6916_vm7 }
 0x313   : > { %v4125_v41 = vsel %vm994_vm3, %v6453_v49, %v3923_v55 }
 0x314   : > { %v4141_v56 = vsel %vm1035_vm4, %v4125_v41, %v3979_v48 }
 0x315   : > { %v4157_v1 = vsel %vm1076_vm5, %v4141_v56, %v3996_v26 }
 0x316   : > { %v4044_v29 = vpop.permute.xlu0 %4043  ;;  %v3998_v59 = vpop.permute.xlu1 %3997 }
 0x31a   : > { %v4024_v44 = vpop.permute.xlu0 %4023  ;;  %v3981_v22 = vpop.permute.xlu1 %3980 }
 0x31b   : > { %v4173_v30 = vsel %vm1117_vm6, %v4157_v1, %v4024_v44  ;;  %v4630_v44 = vunpack.c.h.bf16 %v4652_v38 }
 0x31c   : > { %v4189_v49 = vsel %vm6913_vm11, %v4173_v30, %v4044_v29  ;;  %v4634_v29 = vunpack.c.h.bf16 %v4653_v36 }
 0x31e   : > { %v4061_v28 = vpop.permute.xlu0 %4060 }
 0x31f   : > { %v4205_v46 = vsel %vm1199_vm8, %v4189_v49, %v4061_v28 }
 0x325   : > { %v4046_v45 = vpop.permute.xlu1 %4045 }
 0x327   : > { %v4089_v21 = vpop.permute.xlu0 %4088 }
 0x328   : > { %v4221_v6 = vsel %vm6905_vm10, %v4205_v46, %v4089_v21  ;;  %v4637_v21 = vunpack.c.l.bf16 %v4654_v37 }
 0x329   : > { %v4087_v35 = vpop.permute.xlu1 %4086 }
 0x32a   : > { %v4219_v18 = vsel %vm6914_vm12, %v4203_v4, %v4087_v35 }
 0x32b   : > { %v4235_v16 = vsel %vm6915_vm13, %v4219_v18, %v4107_v19  ;;  %v4109_v0 = vpop.permute.xlu0 %4108 }
 0x32c   : > { %4729 = vmatmul.mubr.msk.bf16.gmra.mrb[8].mxu1 %vm6916_vm7, %v4235_v16  ;;  %v4237_v23 = vsel %vm6917_vm9, %v4221_v6, %v4109_v0  ;;  %v4638_v16 = vunpack.c.h.bf16 %v4654_v37 }
 0x32d   : > { %v3925_v11 = vpop.permute.xlu1 %3924  ;;  %4732 = vmatprep.mubr.msk.bf16.mxu1 %vm6918_vm14, %v4237_v23 }
 0x32e   : > { %v4127_v32 = vsel %vm994_vm3, %v6562_v17, %v3925_v11  ;;  %v4651_v17 = vld [vmem:[%s6759_s13 + $0x8] sm:$0xff]  }
 0x32f   : > { %v4143_v54 = vsel %vm1035_vm4, %v4127_v32, %v3981_v22  ;;  %v4625_v33 = vunpack.c.l.bf16 %v4651_v17  ;;  %v4626_v42 = vunpack.c.h.bf16 %v4651_v17 }
 0x330   : > { %v4159_v7 = vsel %vm1076_vm5, %v4143_v54, %v3998_v59 }
 0x331   : > { %v4026_v51 = vpop.permute.xlu1 %4025 }
 0x332   : > { %v4175_v43 = vsel %vm1117_vm6, %v4159_v7, %v4026_v51  ;;  %v4657_v7 = vld [vmem:[%s6759_s13 + $0x38] sm:$0xff]  }
 0x333   : > { %v4191_v47 = vsel %vm6919_vm15, %v4175_v43, %v4046_v45  ;;  %v4655_v45 = vld [vmem:[%s6759_s13 + $0x28] sm:$0xff]   ;;  %v4649_v43 = vunpack.c.l.bf16 %v4657_v7 }
 0x334   : > { %v4641_v1 = vunpack.c.l.bf16 %v4655_v45  ;;  %v4642_v49 = vunpack.c.h.bf16 %v4655_v45 }
 0x335   : > { %v4063_v60 = vpop.permute.xlu1 %4062 }
 0x336   : > { %v4207_v31 = vsel %vm1199_vm8, %v4191_v47, %v4063_v60  ;;  %v4656_v60 = vld [vmem:[%s6759_s13 + $0x30] sm:$0xff]  }
 0x337   : > { %v4645_v47 = vunpack.c.l.bf16 %v4656_v60  ;;  %v4646_v58 = vunpack.c.h.bf16 %v4656_v60 }
 0x339   : > { %v4091_v39 = vpop.permute.xlu1 %4090 }
 0x33a   : > { %v4223_v3 = vsel %vm6920_vm2, %v4207_v31, %v4091_v39 }
 0x33d   : > { %v4111_v9 = vpop.permute.xlu1 %4110 }
 0x33e   : > { %v4239_v63 = vsel %vm6921_vm0, %v4223_v3, %v4111_v9  ;;  %v4650_v9 = vunpack.c.h.bf16 %v4657_v7 }
 0x33f   : > { %4733 = vmatmul.mubr.msk.bf16.gmra.mrb[12].mxu1 %vm6922_vm1, %v4239_v63 }
 0x391   : > { %v4722_v27 = vpop.f32.mrb[0].mxu1 }
 0x392   : > { %v4329_v34 = vadd.f32 %v4722_v27, %v6766_v14  ;;  %v4320_v61 = vpop.f32.mrb[1].mxu1 }
 0x393   : > { %v4321_v48 = vadd.f32 %v6766_v14, %v4320_v61  ;;  %v4723_v20 = vpop.f32.mrb[2].mxu1 }
 0x394   : > { %v4417_v25 = vadd.f32 %v4625_v33, %v4329_v34  ;;  %v4332_v2 = vadd.f32 %v4723_v20, %v6766_v14  ;;  %v4323_v53 = vpop.f32.mrb[3].mxu1 }
 0x395   : > { %v4415_v40 = vadd.f32 %v4621_v52, %v4321_v48  ;;  %v4324_v50 = vadd.f32 %v6766_v14, %v4323_v53 }
 0x396   : > { %4433 = vst.msk [vmem:[%s6773_s19 + $0x10] sm:$0xff] %vm994_vm3, %v4417_v25  ;;  %v4418_v26 = vadd.f32 %v4626_v42, %v4332_v2 }
 0x397   : > { %4431 = vst.msk [vmem:[%s6773_s19] sm:$0xff] %vm994_vm3, %v4415_v40  ;;  %v4416_v10 = vadd.f32 %v4622_v24, %v4324_v50 }
 0x398   : > { %4434 = vst.msk [vmem:[%s6773_s19 + $0x18] sm:$0xff] %vm994_vm3, %v4418_v26 }
 0x399   : > { %4432 = vst.msk [vmem:[%s6773_s19 + $0x8] sm:$0xff] %vm994_vm3, %v4416_v10 }
 0x3d8   : > { %v4726_v5 = vpop.f32.mrb[4].mxu1 }
 0x3d9   : > { %v4345_v19 = vadd.f32 %v4726_v5, %v6766_v14  ;;  %v4336_v55 = vpop.f32.mrb[5].mxu1 }
 0x3da   : > { %v4337_v59 = vadd.f32 %v6766_v14, %v4336_v55  ;;  %v4727_v12 = vpop.f32.mrb[6].mxu1 }
 0x3db   : > { %v4421_v62 = vadd.f32 %v4633_v13, %v4345_v19  ;;  %v4348_v41 = vadd.f32 %v4727_v12, %v6766_v14  ;;  %v4339_v22 = vpop.f32.mrb[7].mxu1 }
 0x3dc   : > { %v4419_v15 = vadd.f32 %v4629_v8, %v4337_v59  ;;  %v4340_v57 = vadd.f32 %v6766_v14, %v4339_v22 }
 0x3dd   : > { %4437 = vst.msk [vmem:[%s6773_s19 + $0x30] sm:$0xff] %vm994_vm3, %v4421_v62  ;;  %v4422_v56 = vadd.f32 %v4634_v29, %v4348_v41 }
 0x3de   : > { %4435 = vst.msk [vmem:[%s6773_s19 + $0x20] sm:$0xff] %vm994_vm3, %v4419_v15  ;;  %v4420_v28 = vadd.f32 %v4630_v44, %v4340_v57 }
 0x3df   : > { %4438 = vst.msk [vmem:[%s6773_s19 + $0x38] sm:$0xff] %vm994_vm3, %v4422_v56 }
 0x3e0   : > { %4436 = vst.msk [vmem:[%s6773_s19 + $0x28] sm:$0xff] %vm994_vm3, %v4420_v28 }
 0x3ff   : > { %v4730_v30 = vpop.f32.mrb[8].mxu1 }
 0x400   : > { %v4361_v4 = vadd.f32 %v4730_v30, %v6766_v14  ;;  %v4352_v35 = vpop.f32.mrb[9].mxu1 }
 0x401   : > { %v4353_v18 = vadd.f32 %v6766_v14, %v4352_v35  ;;  %v4731_v46 = vpop.f32.mrb[10].mxu1 }
 0x402   : > { %v4425_v6 = vadd.f32 %v4641_v1, %v4361_v4  ;;  %v4364_v0 = vadd.f32 %v4731_v46, %v6766_v14  ;;  %v4355_v23 = vpop.f32.mrb[11].mxu1 }
 0x403   : > { %v4423_v11 = vadd.f32 %v4637_v21, %v4353_v18  ;;  %v4356_v32 = vadd.f32 %v6766_v14, %v4355_v23 }
 0x404   : > { %4441 = vst.msk [vmem:[%s6773_s19 + $0x50] sm:$0xff] %vm994_vm3, %v4425_v6  ;;  %v4426_v51 = vadd.f32 %v4642_v49, %v4364_v0 }
 0x405   : > { %4439 = vst.msk [vmem:[%s6773_s19 + $0x40] sm:$0xff] %vm994_vm3, %v4423_v11  ;;  %v4424_v54 = vadd.f32 %v4638_v16, %v4356_v32 }
 0x406   : > { %4442 = vst.msk [vmem:[%s6773_s19 + $0x58] sm:$0xff] %vm994_vm3, %v4426_v51 }
 0x407   : > { %4440 = vst.msk [vmem:[%s6773_s19 + $0x48] sm:$0xff] %vm994_vm3, %v4424_v54 }
 0x412   : > { %v4734_v39 = vpop.f32.mrb[12].mxu1 }
 0x413   : > { %v4377_v31 = vadd.f32 %v4734_v39, %v6766_v14  ;;  %v4368_v3 = vpop.f32.mrb[13].mxu1 }
 0x414   : > { %v4369_v63 = vadd.f32 %v6766_v14, %v4368_v3  ;;  %v4735_v17 = vpop.f32.mrb[14].mxu1 }
 0x415   : > { %v4429_v33 = vadd.f32 %v4649_v43, %v4377_v31  ;;  %v4380_v27 = vadd.f32 %v4735_v17, %v6766_v14  ;;  %v4371_v52 = vpop.f32.mrb[15].mxu1 }
 0x416   : > { %v4427_v34 = vadd.f32 %v4645_v47, %v4369_v63  ;;  %v4372_v61 = vadd.f32 %v6766_v14, %v4371_v52 }
 0x417   : > { %4445 = vst.msk [vmem:[%s6773_s19 + $0x70] sm:$0xff] %vm994_vm3, %v4429_v33  ;;  %v4430_v42 = vadd.f32 %v4650_v9, %v4380_v27 }
 0x418   : > { %4443 = vst.msk [vmem:[%s6773_s19 + $0x60] sm:$0xff] %vm994_vm3, %v4427_v34  ;;  %v4428_v48 = vadd.f32 %v4646_v58, %v4372_v61 }
 0x419   : > { %4446 = vst.msk [vmem:[%s6773_s19 + $0x78] sm:$0xff] %vm994_vm3, %v4430_v42 }
 0x41a   : > { %4444 = vst.msk [vmem:[%s6773_s19 + $0x68] sm:$0xff] %vm994_vm3, %v4428_v48 }
 0x41b PF: > { %s16_s25 = sadd.s32 1, %s4867_s25   ;;  %s6923_s21 = smov %s4859_s23 }
 0x41c   : > { %p13_p6 = scmp.ge.s32.totalorder %s16_s25, 6   ;;  %s6924_s22 = smov %s4863_s24 }
 0x41d   : > { %s6925_s23 = smov %s6928_s26  ;;  %s6926_s24 = smov %s6932_s27 }
 0x41e   :  { %15 = sbr.rel (!%p13_p6) target bundleno = 3 (0x3), region = 77 }

</bundles_post_ra>
